<compile_context>
chip_gen: v7x
topology: tpu7x:2x2x1
jax: 0.10.0
libtpu: 0.0.40
codegen_flags: <defaults>
</compile_context>

<pallas_src>
import functools
import math

import jax
import jax.numpy as jnp
from jax.experimental import pallas as pl
from jax.experimental.pallas import tpu as pltpu

LN_EPS = 1e-6  # LayerNormalization(eps=1e-6): gamma*(z-mean)/(std+eps)+beta (unbiased std)


def _layer_norm(z, gamma, beta):
    # Matches the custom LayerNormalization class (torch .std() default ddof=1,
    # eps added to std, not to var).  NOT torch.nn.LayerNorm.
    d = z.shape[-1]
    mean = z.mean(axis=-1, keepdims=True)
    zc = z - mean
    var = (zc * zc).sum(axis=-1, keepdims=True) * (1.0 / (d - 1))
    return gamma * (zc / (jnp.sqrt(var) + LN_EPS)) + beta


# ---------------------------------------------------------------------------
# Kernel: one encoder layer for Bt batch elements; grid = (B//Bt, n_layers).
# ---------------------------------------------------------------------------
def encoder_stack_kernel(x_in_ref, wq_ref, wk_ref, wv_ref, wo_ref, w1_ref, w2_ref,
                         vec_ref, *outs_and_scratch, n_heads, d_k, d_v, emit_attn):
    if emit_attn:
        out_ref, attn_ref, x_state, ctx_scr = outs_and_scratch
    else:
        out_ref, x_state, ctx_scr = outs_and_scratch
        attn_ref = None

    l = pl.program_id(1)
    H = n_heads
    Bt, S, D = x_in_ref.shape
    M = Bt * S
    d_ff = w1_ref.shape[2]

    # Layer 0: (embedding + positional encoding) enters the resident VMEM state
    # and stays on-chip across all layer steps.
    @pl.when(l == 0)
    def _():
        x_state[...] = x_in_ref[...].reshape(M, D)
    # dropout_emb / residual dropouts: eval mode -> identity.

    # Unpack the packed per-layer bias / LayerNorm vectors (single DMA stream).
    off = [0]

    def take(n):
        v = vec_ref[0, :, off[0]:off[0] + n]          # (1, n) static lane slice
        off[0] += n
        return v

    bq = take(H * d_k); bk = take(H * d_k); bv = take(H * d_v)
    bo = take(D); ln1g = take(D); ln1b = take(D)
    b1 = take(d_ff); b2 = take(D); ln2g = take(D); ln2b = take(D)

    x = x_state[...]                                   # (M, D) f32
    xb = x.astype(jnp.bfloat16)                        # bf16 MXU operands

    # ---- fused whole-head projections (M = Bt*S rows fill the MXU M dim) ----
    q = jnp.dot(xb, wq_ref[0], preferred_element_type=jnp.float32) + bq   # (M, H*d_k)
    k = jnp.dot(xb, wk_ref[0], preferred_element_type=jnp.float32) + bk   # (M, H*d_k)
    v = jnp.dot(xb, wv_ref[0], preferred_element_type=jnp.float32) + bv   # (M, H*d_v)

    scale = jnp.float32(1.0 / math.sqrt(d_k))

    # ---- per-head attention (static unrolled loop, no stack/concat) ----
    # attn_mask is None in this configuration (unmasked softmax).
    for h in range(H):
        q_h = q[:, h * d_k:(h + 1) * d_k].reshape(Bt, S, d_k).astype(jnp.bfloat16)
        k_h = k[:, h * d_k:(h + 1) * d_k].reshape(Bt, S, d_k).astype(jnp.bfloat16)
        v_h = v[:, h * d_v:(h + 1) * d_v].reshape(Bt, S, d_v).astype(jnp.bfloat16)

        s = jnp.einsum('bqd,bkd->bqk', q_h, k_h,
                       preferred_element_type=jnp.float32) * scale        # (Bt,S,S) f32
        s = s - s.max(axis=-1, keepdims=True)
        p = jnp.exp(s)
        attn_h = p / p.sum(axis=-1, keepdims=True)     # exact divide (reference parity)

        if emit_attn:
            attn_ref[0, :, h, :, :] = attn_h.astype(attn_ref.dtype)

        ctx_h = jnp.einsum('bqk,bkd->bqd', attn_h.astype(jnp.bfloat16), v_h,
                           preferred_element_type=jnp.float32)            # (Bt,S,d_v)
        ctx_scr[:, h * d_v:(h + 1) * d_v] = ctx_h.reshape(M, d_v)

    # ---- output projection + Add&LayerNorm ----
    proj = jnp.dot(ctx_scr[...].astype(jnp.bfloat16), wo_ref[0],
                   preferred_element_type=jnp.float32) + bo               # (M, D)
    h1 = _layer_norm(x + proj, ln1g, ln1b)

    # ---- position-wise FFN (Conv1d kernel=1 == matmul) + Add&LayerNorm ----
    f = jnp.dot(h1.astype(jnp.bfloat16), w1_ref[0],
                preferred_element_type=jnp.float32) + b1
    f = jnp.maximum(f, 0.0)
    f = jnp.dot(f.astype(jnp.bfloat16), w2_ref[0],
                preferred_element_type=jnp.float32) + b2
    h2 = _layer_norm(h1 + f, ln2g, ln2b)

    x_state[...] = h2                                  # stays resident for next layer

    @pl.when(l == pl.num_programs(1) - 1)
    def _():
        out_ref[...] = h2.reshape(Bt, S, D).astype(out_ref.dtype)


# ---------------------------------------------------------------------------
# Wrappers
# ---------------------------------------------------------------------------
_MATMUL_WEIGHTS = ('wq', 'wk', 'wv', 'wo', 'w1', 'w2')
_VECTOR_PARAMS = ('bq', 'bk', 'bv', 'bo', 'ln1_g', 'ln1_b', 'b1', 'b2', 'ln2_g', 'ln2_b')


def encoder_forward(enc_inputs, enc_inputs_len, emb_table, pos_table, params,
                    *, n_heads, d_k, d_v, pos=True, attn_mask=None,
                    attn_dtype=jnp.bfloat16, return_attn=True, block_b=None):
    assert attn_mask is None  # TODO(synk): padding attention mask not implemented.
    B, S = enc_inputs.shape
    D = emb_table.shape[1]
    L = params['wq'].shape[0]
    H = n_heads

    # Embedding gather + positional-encoding add stay in XLA (fused, single stream).
    x = emb_table[enc_inputs].astype(jnp.float32)                     # (B, S, D)
    if pos:
        idx = jnp.arange(1, S + 1, dtype=jnp.int32)[None, :]
        input_pos = jnp.where(idx <= enc_inputs_len[:, None], idx, 0)
        x = x + pos_table[input_pos]                                   # zeros at padding
    # TODO(synk): training-mode dropout (stateful PRNG masks) not implemented.

    # Batch tile: biggest divisor of B with Bt*S <= 256 rows (fills MXU M at small
    # S and cuts per-layer weight re-DMA by Bt x).  Note: on v7x keep the parallel
    # axis (B//Bt) >= 2 when possible to feed both TensorCores.
    if block_b is None:
        block_b = 1
        for c in range(1, B + 1):
            if B % c == 0 and c * S <= 256:
                block_b = c
    Bt = block_b
    assert B % Bt == 0

    weights = [params[n].astype(jnp.bfloat16) for n in _MATMUL_WEIGHTS]
    vec = jnp.concatenate([params[n] for n in _VECTOR_PARAMS],
                          axis=-1).astype(jnp.float32)                 # (L, 1, K_total)

    kernel = functools.partial(encoder_stack_kernel, n_heads=H, d_k=d_k, d_v=d_v,
                               emit_attn=return_attn)

    x_spec = pl.BlockSpec((Bt, S, D), lambda b, l: (b, 0, 0))
    w_spec = lambda w: pl.BlockSpec((1,) + tuple(w.shape[1:]), lambda b, l: (l, 0, 0))

    out_shape = [jax.ShapeDtypeStruct((B, S, D), jnp.float32)]
    out_specs = [pl.BlockSpec((Bt, S, D), lambda b, l: (b, 0, 0))]
    if return_attn:
        out_shape.append(jax.ShapeDtypeStruct((L, B, H, S, S), attn_dtype))
        out_specs.append(pl.BlockSpec((1, Bt, H, S, S), lambda b, l: (l, b, 0, 0, 0)))

    # VMEM budget per generation: tight on v7x (64 MiB physical), roomy on v5e/v6e.
    try:
        phys = pltpu.get_tpu_info().vmem_capacity_bytes
        vmem_limit = max(32 << 20, min(int(phys) * 3 // 4, 100 << 20))
    except Exception:
        vmem_limit = 48 << 20

    outs = pl.pallas_call(
        kernel,
        out_shape=tuple(out_shape),
        grid=(B // Bt, L),
        in_specs=[x_spec] + [w_spec(w) for w in weights] + [w_spec(vec)],
        out_specs=tuple(out_specs),
        scratch_shapes=[pltpu.VMEM((Bt * S, D), jnp.float32),        # resident activation
                        pltpu.VMEM((Bt * S, H * d_v), jnp.float32)],  # per-head ctx slab
        compiler_params=pltpu.CompilerParams(
            dimension_semantics=("parallel", "arbitrary"),
            vmem_limit_bytes=vmem_limit),
    )(x, *weights, vec)

    if return_attn:
        out, attn_all = outs
        attns = [attn_all[l] for l in range(L)]      # each (B, H, S, S), no transpose pass
    else:
        (out,) = outs
        attns = []
    return out, attns


def make_pos_table(n_position, d_model):
    # Sinusoidal table with a zero "pad" row prepended (index 0).
    pos = jnp.arange(n_position, dtype=jnp.float32)[:, None]
    j = jnp.arange(d_model)
    angle = pos / jnp.power(10000.0, (2.0 * (j // 2)).astype(jnp.float32) / d_model)
    table = jnp.where((j % 2 == 0)[None, :], jnp.sin(angle), jnp.cos(angle))
    return jnp.concatenate([jnp.zeros((1, d_model), jnp.float32), table], axis=0)


def init_params(key, n_layers, d_model, d_k, d_v, d_ff, n_heads, src_vocab_size, pad_idx):
    k_emb, k_lay = jax.random.split(key)
    emb = 0.02 * jax.random.normal(k_emb, (src_vocab_size, d_model), jnp.float32)
    emb = emb.at[pad_idx].set(0.0)          # nn.Embedding(padding_idx=pad) -> zero row

    lk = jax.random.split(k_lay, 6 * n_layers)
    L, H = n_layers, n_heads

    def rnd(k, shape):
        return 0.02 * jax.random.normal(k, shape, jnp.float32)

    # Per-layer weights stacked on a leading layer axis; per-head projections
    # are stored fused along the lane axis: wq/wk/wv (D, H*d_k), wo (H*d_v, D).
    params = dict(
        wq=jnp.stack([rnd(lk[6 * l + 0], (d_model, H * d_k)) for l in range(L)]),
        bq=jnp.zeros((L, 1, H * d_k), jnp.float32),
        wk=jnp.stack([rnd(lk[6 * l + 1], (d_model, H * d_k)) for l in range(L)]),
        bk=jnp.zeros((L, 1, H * d_k), jnp.float32),
        wv=jnp.stack([rnd(lk[6 * l + 2], (d_model, H * d_v)) for l in range(L)]),
        bv=jnp.zeros((L, 1, H * d_v), jnp.float32),
        wo=jnp.stack([rnd(lk[6 * l + 3], (H * d_v, d_model)) for l in range(L)]),
        bo=jnp.zeros((L, 1, d_model), jnp.float32),
        ln1_g=jnp.ones((L, 1, d_model), jnp.float32),
        ln1_b=jnp.zeros((L, 1, d_model), jnp.float32),
        w1=jnp.stack([rnd(lk[6 * l + 4], (d_model, d_ff)) for l in range(L)]),
        b1=jnp.zeros((L, 1, d_ff), jnp.float32),
        w2=jnp.stack([rnd(lk[6 * l + 5], (d_ff, d_model)) for l in range(L)]),
        b2=jnp.zeros((L, 1, d_model), jnp.float32),
        ln2_g=jnp.ones((L, 1, d_model), jnp.float32),
        ln2_b=jnp.zeros((L, 1, d_model), jnp.float32),
    )
    return emb, params


# ---------------------------------------------------------------------------
if __name__ == "__main__":
    B, S = 2, 8
    d_model, d_ff = 32, 64
    n_heads, d_k, d_v = 2, 16, 16
    n_layers = 2
    src_vocab_size = 10
    max_seq_len = S
    pad_idx = 0

    key = jax.random.PRNGKey(0)
    k_tok, k_par = jax.random.split(key)

    tokens = jax.random.randint(k_tok, (B, S), 1, src_vocab_size)
    lengths = jnp.array([S, S - 2], dtype=jnp.int32)
    valid = jnp.arange(S)[None, :] < lengths[:, None]
    tokens = jnp.where(valid, tokens, pad_idx).astype(jnp.int32)

    emb_table, params = init_params(
        k_par, n_layers, d_model, d_k, d_v, d_ff, n_heads, src_vocab_size, pad_idx)
    pos_table = make_pos_table(max_seq_len * 10, d_model)

    enc_out, enc_attns = encoder_forward(
        tokens, lengths, emb_table, pos_table, params,
        n_heads=n_heads, d_k=d_k, d_v=d_v, pos=True, attn_mask=None)

    jax.block_until_ready(enc_out)
    for a in enc_attns:
        jax.block_until_ready(a)

    assert enc_out.shape == (B, S, d_model)
    assert all(a.shape == (B, n_heads, S, S) for a in enc_attns)
    assert bool(jnp.all(jnp.isfinite(enc_out)))
    assert all(bool(jnp.all(jnp.isfinite(a.astype(jnp.float32)))) for a in enc_attns)
    # Softmax rows should sum to ~1 (exact divide in kernel).
    row_sums = enc_attns[0].astype(jnp.float32).sum(-1)
    assert bool(jnp.all(jnp.abs(row_sums - 1.0) < 1e-2))
    print("KERNEL_OK")
</pallas_src>

<mosaic_0001>
module attributes {stable_mosaic.version = 11 : i64} {
  func.func @encoder_stack_kernel(%arg0: i32, %arg1: i32, %arg2: memref<2x8x32xf32, #tpu.memory_space<vmem>>, %arg3: memref<1x32x32xbf16, #tpu.memory_space<vmem>>, %arg4: memref<1x32x32xbf16, #tpu.memory_space<vmem>>, %arg5: memref<1x32x32xbf16, #tpu.memory_space<vmem>>, %arg6: memref<1x32x32xbf16, #tpu.memory_space<vmem>>, %arg7: memref<1x32x64xbf16, #tpu.memory_space<vmem>>, %arg8: memref<1x64x32xbf16, #tpu.memory_space<vmem>>, %arg9: memref<1x1x352xf32, #tpu.memory_space<vmem>>, %arg10: memref<2x8x32xf32, #tpu.memory_space<vmem>>, %arg11: memref<1x2x2x8x8xbf16, #tpu.memory_space<vmem>>, %arg12: memref<16x32xf32, #tpu.memory_space<vmem>>, %arg13: memref<16x32xf32, #tpu.memory_space<vmem>>) attributes {dimension_semantics = [#tpu.dimension_semantics<parallel>, #tpu.dimension_semantics<arbitrary>], iteration_bounds = array<i64: 1, 2>, scalar_prefetch = 0 : i64, scratch_operands = 2 : i64, tpu.core_type = #tpu.core_type<tc>, window_params = [{transform_indices = @transform_0, window_bounds = array<i64: 2, 8, 32>}, {transform_indices = @transform_1, window_bounds = array<i64: 1, 32, 32>}, {transform_indices = @transform_2, window_bounds = array<i64: 1, 32, 32>}, {transform_indices = @transform_3, window_bounds = array<i64: 1, 32, 32>}, {transform_indices = @transform_4, window_bounds = array<i64: 1, 32, 32>}, {transform_indices = @transform_5, window_bounds = array<i64: 1, 32, 64>}, {transform_indices = @transform_6, window_bounds = array<i64: 1, 64, 32>}, {transform_indices = @transform_7, window_bounds = array<i64: 1, 1, 352>}, {transform_indices = @transform_8, window_bounds = array<i64: 2, 8, 32>}, {transform_indices = @transform_9, window_bounds = array<i64: 1, 2, 2, 8, 8>}]} {
    %c0_i32 = arith.constant 0 : i32
    %0 = arith.cmpi eq, %arg1, %c0_i32 : i32
    %1 = arith.extui %0 : i1 to i32
    %c0_i32_0 = arith.constant 0 : i32
    %2 = arith.cmpi ne, %1, %c0_i32_0 : i32
    scf.if %2 {
      %c0_84 = arith.constant 0 : index
      %c0_85 = arith.constant 0 : index
      %c0_86 = arith.constant 0 : index
      %165 = vector.load %arg2[%c0_84, %c0_85, %c0_86] : memref<2x8x32xf32, #tpu.memory_space<vmem>>, vector<2x8x32xf32>
      %166 = vector.shape_cast %165 : vector<2x8x32xf32> to vector<16x32xf32>
      %c0_87 = arith.constant 0 : index
      %c0_88 = arith.constant 0 : index
      %167 = vector.load %arg12[%c0_87, %c0_88] : memref<16x32xf32, #tpu.memory_space<vmem>>, vector<16x32xf32>
      tpu.vector_store %arg12[%c0_87, %c0_88], %166 {strides = array<i32>} : memref<16x32xf32, #tpu.memory_space<vmem>>, vector<16x32xf32>,
    } else {
    }
    %c0 = arith.constant 0 : index
    %c0_1 = arith.constant 0 : index
    %c0_2 = arith.constant 0 : index
    %3 = vector.load %arg9[%c0, %c0_1, %c0_2] : memref<1x1x352xf32, #tpu.memory_space<vmem>>, vector<1x1x32xf32>
    %4 = vector.shape_cast %3 : vector<1x1x32xf32> to vector<1x32xf32>
    %c0_3 = arith.constant 0 : index
    %c0_4 = arith.constant 0 : index
    %c32 = arith.constant 32 : index
    %5 = vector.load %arg9[%c0_3, %c0_4, %c32] : memref<1x1x352xf32, #tpu.memory_space<vmem>>, vector<1x1x32xf32>
    %6 = vector.shape_cast %5 : vector<1x1x32xf32> to vector<1x32xf32>
    %c0_5 = arith.constant 0 : index
    %c0_6 = arith.constant 0 : index
    %c64 = arith.constant 64 : index
    %7 = vector.load %arg9[%c0_5, %c0_6, %c64] : memref<1x1x352xf32, #tpu.memory_space<vmem>>, vector<1x1x32xf32>
    %8 = vector.shape_cast %7 : vector<1x1x32xf32> to vector<1x32xf32>
    %c0_7 = arith.constant 0 : index
    %c0_8 = arith.constant 0 : index
    %c96 = arith.constant 96 : index
    %9 = vector.load %arg9[%c0_7, %c0_8, %c96] : memref<1x1x352xf32, #tpu.memory_space<vmem>>, vector<1x1x32xf32>
    %10 = vector.shape_cast %9 : vector<1x1x32xf32> to vector<1x32xf32>
    %c0_9 = arith.constant 0 : index
    %c0_10 = arith.constant 0 : index
    %c128 = arith.constant 128 : index
    %11 = vector.load %arg9[%c0_9, %c0_10, %c128] : memref<1x1x352xf32, #tpu.memory_space<vmem>>, vector<1x1x32xf32>
    %12 = vector.shape_cast %11 : vector<1x1x32xf32> to vector<1x32xf32>
    %c0_11 = arith.constant 0 : index
    %c0_12 = arith.constant 0 : index
    %c160 = arith.constant 160 : index
    %13 = vector.load %arg9[%c0_11, %c0_12, %c160] : memref<1x1x352xf32, #tpu.memory_space<vmem>>, vector<1x1x32xf32>
    %14 = vector.shape_cast %13 : vector<1x1x32xf32> to vector<1x32xf32>
    %c0_13 = arith.constant 0 : index
    %c0_14 = arith.constant 0 : index
    %c192 = arith.constant 192 : index
    %15 = vector.load %arg9[%c0_13, %c0_14, %c192] : memref<1x1x352xf32, #tpu.memory_space<vmem>>, vector<1x1x64xf32>
    %16 = vector.shape_cast %15 : vector<1x1x64xf32> to vector<1x64xf32>
    %c0_15 = arith.constant 0 : index
    %c0_16 = arith.constant 0 : index
    %c256 = arith.constant 256 : index
    %17 = vector.load %arg9[%c0_15, %c0_16, %c256] : memref<1x1x352xf32, #tpu.memory_space<vmem>>, vector<1x1x32xf32>
    %18 = vector.shape_cast %17 : vector<1x1x32xf32> to vector<1x32xf32>
    %c0_17 = arith.constant 0 : index
    %c0_18 = arith.constant 0 : index
    %c288 = arith.constant 288 : index
    %19 = vector.load %arg9[%c0_17, %c0_18, %c288] : memref<1x1x352xf32, #tpu.memory_space<vmem>>, vector<1x1x32xf32>
    %20 = vector.shape_cast %19 : vector<1x1x32xf32> to vector<1x32xf32>
    %c0_19 = arith.constant 0 : index
    %c0_20 = arith.constant 0 : index
    %c320 = arith.constant 320 : index
    %21 = vector.load %arg9[%c0_19, %c0_20, %c320] : memref<1x1x352xf32, #tpu.memory_space<vmem>>, vector<1x1x32xf32>
    %22 = vector.shape_cast %21 : vector<1x1x32xf32> to vector<1x32xf32>
    %c0_21 = arith.constant 0 : index
    %c0_22 = arith.constant 0 : index
    %23 = vector.load %arg12[%c0_21, %c0_22] : memref<16x32xf32, #tpu.memory_space<vmem>>, vector<16x32xf32>
    %24 = arith.truncf %23 : vector<16x32xf32> to vector<16x32xbf16>
    %c0_23 = arith.constant 0 : index
    %c0_24 = arith.constant 0 : index
    %c0_25 = arith.constant 0 : index
    %25 = vector.load %arg3[%c0_23, %c0_24, %c0_25] : memref<1x32x32xbf16, #tpu.memory_space<vmem>>, vector<1x32x32xbf16>
    %26 = vector.shape_cast %25 : vector<1x32x32xbf16> to vector<32x32xbf16>
    %cst = arith.constant dense<0.000000e+00> : vector<16x32xf32>
    %27 = tpu.matmul %24, %26, %cst {dimension_numbers = #tpu.dot_dimension_numbers<[1], [0], [0], [1], [0, 0, 1, 1], [], []>} : vector<16x32xbf16>, vector<32x32xbf16>, vector<16x32xf32> -> vector<16x32xf32>
    %28 = vector.broadcast %4 : vector<1x32xf32> to vector<16x32xf32>
    %29 = arith.addf %27, %28 : vector<16x32xf32>
    %c0_26 = arith.constant 0 : index
    %c0_27 = arith.constant 0 : index
    %c0_28 = arith.constant 0 : index
    %30 = vector.load %arg4[%c0_26, %c0_27, %c0_28] : memref<1x32x32xbf16, #tpu.memory_space<vmem>>, vector<1x32x32xbf16>
    %31 = vector.shape_cast %30 : vector<1x32x32xbf16> to vector<32x32xbf16>
    %cst_29 = arith.constant dense<0.000000e+00> : vector<16x32xf32>
    %32 = tpu.matmul %24, %31, %cst_29 {dimension_numbers = #tpu.dot_dimension_numbers<[1], [0], [0], [1], [0, 0, 1, 1], [], []>} : vector<16x32xbf16>, vector<32x32xbf16>, vector<16x32xf32> -> vector<16x32xf32>
    %33 = vector.broadcast %6 : vector<1x32xf32> to vector<16x32xf32>
    %34 = arith.addf %32, %33 : vector<16x32xf32>
    %c0_30 = arith.constant 0 : index
    %c0_31 = arith.constant 0 : index
    %c0_32 = arith.constant 0 : index
    %35 = vector.load %arg5[%c0_30, %c0_31, %c0_32] : memref<1x32x32xbf16, #tpu.memory_space<vmem>>, vector<1x32x32xbf16>
    %36 = vector.shape_cast %35 : vector<1x32x32xbf16> to vector<32x32xbf16>
    %cst_33 = arith.constant dense<0.000000e+00> : vector<16x32xf32>
    %37 = tpu.matmul %24, %36, %cst_33 {dimension_numbers = #tpu.dot_dimension_numbers<[1], [0], [0], [1], [0, 0, 1, 1], [], []>} : vector<16x32xbf16>, vector<32x32xbf16>, vector<16x32xf32> -> vector<16x32xf32>
    %38 = vector.broadcast %8 : vector<1x32xf32> to vector<16x32xf32>
    %39 = arith.addf %37, %38 : vector<16x32xf32>
    %40 = vector.extract_strided_slice %29 {offsets = [0, 0], sizes = [16, 16], strides = [1, 1]} : vector<16x32xf32> to vector<16x16xf32>
    %41 = vector.shape_cast %40 : vector<16x16xf32> to vector<2x8x16xf32>
    %42 = arith.truncf %41 : vector<2x8x16xf32> to vector<2x8x16xbf16>
    %43 = vector.extract_strided_slice %34 {offsets = [0, 0], sizes = [16, 16], strides = [1, 1]} : vector<16x32xf32> to vector<16x16xf32>
    %44 = vector.shape_cast %43 : vector<16x16xf32> to vector<2x8x16xf32>
    %45 = arith.truncf %44 : vector<2x8x16xf32> to vector<2x8x16xbf16>
    %46 = vector.extract_strided_slice %39 {offsets = [0, 0], sizes = [16, 16], strides = [1, 1]} : vector<16x32xf32> to vector<16x16xf32>
    %47 = vector.shape_cast %46 : vector<16x16xf32> to vector<2x8x16xf32>
    %48 = arith.truncf %47 : vector<2x8x16xf32> to vector<2x8x16xbf16>
    "tpu.trace_start"() <{level = 10 : i32, message = "bqd,bkd->bqk"}> : () -> ()
    %cst_34 = arith.constant dense<0.000000e+00> : vector<2x8x8xf32>
    %49 = tpu.matmul %42, %45, %cst_34 {dimension_numbers = #tpu.dot_dimension_numbers<[2], [2], [1], [1], [0, 0, 0, 1, 1, 1], [0], [0]>} : vector<2x8x16xbf16>, vector<2x8x16xbf16>, vector<2x8x8xf32> -> vector<2x8x8xf32>
    "tpu.trace_stop"() : () -> ()
    %cst_35 = arith.constant 2.500000e-01 : f32
    %50 = vector.broadcast %cst_35 : f32 to vector<2x8x8xf32>
    %51 = arith.mulf %49, %50 : vector<2x8x8xf32>
    %cst_36 = arith.constant dense<0xFF800000> : vector<2x8xf32>
    %52 = vector.multi_reduction <maximumf>, %51, %cst_36 [2] : vector<2x8x8xf32> to vector<2x8xf32>
    %53 = vector.shape_cast %52 : vector<2x8xf32> to vector<2x8x1xf32>
    %54 = vector.broadcast %53 : vector<2x8x1xf32> to vector<2x8x8xf32>
    %55 = arith.subf %51, %54 : vector<2x8x8xf32>
    %56 = math.exp %55 : vector<2x8x8xf32>
    %cst_37 = arith.constant dense<0.000000e+00> : vector<2x8xf32>
    %57 = vector.multi_reduction <add>, %56, %cst_37 [2] : vector<2x8x8xf32> to vector<2x8xf32>
    %58 = vector.shape_cast %57 : vector<2x8xf32> to vector<2x8x1xf32>
    %59 = vector.broadcast %58 : vector<2x8x1xf32> to vector<2x8x8xf32>
    %60 = arith.divf %56, %59 : vector<2x8x8xf32>
    %61 = arith.truncf %60 : vector<2x8x8xf32> to vector<2x8x8xbf16>
    %c0_38 = arith.constant 0 : index
    %c0_39 = arith.constant 0 : index
    %c0_40 = arith.constant 0 : index
    %c0_41 = arith.constant 0 : index
    %c0_42 = arith.constant 0 : index
    %62 = vector.load %arg11[%c0_38, %c0_39, %c0_40, %c0_41, %c0_42] : memref<1x2x2x8x8xbf16, #tpu.memory_space<vmem>>, vector<1x2x1x8x8xbf16>
    %63 = vector.shape_cast %62 : vector<1x2x1x8x8xbf16> to vector<2x8x8xbf16>
    %64 = vector.shape_cast %61 : vector<2x8x8xbf16> to vector<1x2x1x8x8xbf16>
    tpu.vector_store %arg11[%c0_38, %c0_39, %c0_40, %c0_41, %c0_42], %64 {strides = array<i32>} : memref<1x2x2x8x8xbf16, #tpu.memory_space<vmem>>, vector<1x2x1x8x8xbf16>,
    %65 = arith.truncf %60 : vector<2x8x8xf32> to vector<2x8x8xbf16>
    "tpu.trace_start"() <{level = 10 : i32, message = "bqk,bkd->bqd"}> : () -> ()
    %cst_43 = arith.constant dense<0.000000e+00> : vector<2x8x16xf32>
    %66 = tpu.matmul %65, %48, %cst_43 {dimension_numbers = #tpu.dot_dimension_numbers<[2], [1], [1], [2], [0, 0, 0, 1, 1, 2], [0], [0]>} : vector<2x8x8xbf16>, vector<2x8x16xbf16>, vector<2x8x16xf32> -> vector<2x8x16xf32>
    "tpu.trace_stop"() : () -> ()
    %67 = vector.shape_cast %66 : vector<2x8x16xf32> to vector<16x16xf32>
    %c0_44 = arith.constant 0 : index
    %c0_45 = arith.constant 0 : index
    %68 = vector.load %arg13[%c0_44, %c0_45] : memref<16x32xf32, #tpu.memory_space<vmem>>, vector<16x16xf32>
    tpu.vector_store %arg13[%c0_44, %c0_45], %67 {strides = array<i32>} : memref<16x32xf32, #tpu.memory_space<vmem>>, vector<16x16xf32>,
    %69 = vector.extract_strided_slice %29 {offsets = [0, 16], sizes = [16, 16], strides = [1, 1]} : vector<16x32xf32> to vector<16x16xf32>
    %70 = vector.shape_cast %69 : vector<16x16xf32> to vector<2x8x16xf32>
    %71 = arith.truncf %70 : vector<2x8x16xf32> to vector<2x8x16xbf16>
    %72 = vector.extract_strided_slice %34 {offsets = [0, 16], sizes = [16, 16], strides = [1, 1]} : vector<16x32xf32> to vector<16x16xf32>
    %73 = vector.shape_cast %72 : vector<16x16xf32> to vector<2x8x16xf32>
    %74 = arith.truncf %73 : vector<2x8x16xf32> to vector<2x8x16xbf16>
    %75 = vector.extract_strided_slice %39 {offsets = [0, 16], sizes = [16, 16], strides = [1, 1]} : vector<16x32xf32> to vector<16x16xf32>
    %76 = vector.shape_cast %75 : vector<16x16xf32> to vector<2x8x16xf32>
    %77 = arith.truncf %76 : vector<2x8x16xf32> to vector<2x8x16xbf16>
    "tpu.trace_start"() <{level = 10 : i32, message = "bqd,bkd->bqk"}> : () -> ()
    %cst_46 = arith.constant dense<0.000000e+00> : vector<2x8x8xf32>
    %78 = tpu.matmul %71, %74, %cst_46 {dimension_numbers = #tpu.dot_dimension_numbers<[2], [2], [1], [1], [0, 0, 0, 1, 1, 1], [0], [0]>} : vector<2x8x16xbf16>, vector<2x8x16xbf16>, vector<2x8x8xf32> -> vector<2x8x8xf32>
    "tpu.trace_stop"() : () -> ()
    %cst_47 = arith.constant 2.500000e-01 : f32
    %79 = vector.broadcast %cst_47 : f32 to vector<2x8x8xf32>
    %80 = arith.mulf %78, %79 : vector<2x8x8xf32>
    %cst_48 = arith.constant dense<0xFF800000> : vector<2x8xf32>
    %81 = vector.multi_reduction <maximumf>, %80, %cst_48 [2] : vector<2x8x8xf32> to vector<2x8xf32>
    %82 = vector.shape_cast %81 : vector<2x8xf32> to vector<2x8x1xf32>
    %83 = vector.broadcast %82 : vector<2x8x1xf32> to vector<2x8x8xf32>
    %84 = arith.subf %80, %83 : vector<2x8x8xf32>
    %85 = math.exp %84 : vector<2x8x8xf32>
    %cst_49 = arith.constant dense<0.000000e+00> : vector<2x8xf32>
    %86 = vector.multi_reduction <add>, %85, %cst_49 [2] : vector<2x8x8xf32> to vector<2x8xf32>
    %87 = vector.shape_cast %86 : vector<2x8xf32> to vector<2x8x1xf32>
    %88 = vector.broadcast %87 : vector<2x8x1xf32> to vector<2x8x8xf32>
    %89 = arith.divf %85, %88 : vector<2x8x8xf32>
    %90 = arith.truncf %89 : vector<2x8x8xf32> to vector<2x8x8xbf16>
    %c0_50 = arith.constant 0 : index
    %c0_51 = arith.constant 0 : index
    %c1 = arith.constant 1 : index
    %c0_52 = arith.constant 0 : index
    %c0_53 = arith.constant 0 : index
    %91 = vector.load %arg11[%c0_50, %c0_51, %c1, %c0_52, %c0_53] : memref<1x2x2x8x8xbf16, #tpu.memory_space<vmem>>, vector<1x2x1x8x8xbf16>
    %92 = vector.shape_cast %91 : vector<1x2x1x8x8xbf16> to vector<2x8x8xbf16>
    %93 = vector.shape_cast %90 : vector<2x8x8xbf16> to vector<1x2x1x8x8xbf16>
    tpu.vector_store %arg11[%c0_50, %c0_51, %c1, %c0_52, %c0_53], %93 {strides = array<i32>} : memref<1x2x2x8x8xbf16, #tpu.memory_space<vmem>>, vector<1x2x1x8x8xbf16>,
    %94 = arith.truncf %89 : vector<2x8x8xf32> to vector<2x8x8xbf16>
    "tpu.trace_start"() <{level = 10 : i32, message = "bqk,bkd->bqd"}> : () -> ()
    %cst_54 = arith.constant dense<0.000000e+00> : vector<2x8x16xf32>
    %95 = tpu.matmul %94, %77, %cst_54 {dimension_numbers = #tpu.dot_dimension_numbers<[2], [1], [1], [2], [0, 0, 0, 1, 1, 2], [0], [0]>} : vector<2x8x8xbf16>, vector<2x8x16xbf16>, vector<2x8x16xf32> -> vector<2x8x16xf32>
    "tpu.trace_stop"() : () -> ()
    %96 = vector.shape_cast %95 : vector<2x8x16xf32> to vector<16x16xf32>
    %c0_55 = arith.constant 0 : index
    %c16 = arith.constant 16 : index
    %97 = vector.load %arg13[%c0_55, %c16] : memref<16x32xf32, #tpu.memory_space<vmem>>, vector<16x16xf32>
    tpu.vector_store %arg13[%c0_55, %c16], %96 {strides = array<i32>} : memref<16x32xf32, #tpu.memory_space<vmem>>, vector<16x16xf32>,
    %c0_56 = arith.constant 0 : index
    %c0_57 = arith.constant 0 : index
    %98 = vector.load %arg13[%c0_56, %c0_57] : memref<16x32xf32, #tpu.memory_space<vmem>>, vector<16x32xf32>
    %99 = arith.truncf %98 : vector<16x32xf32> to vector<16x32xbf16>
    %c0_58 = arith.constant 0 : index
    %c0_59 = arith.constant 0 : index
    %c0_60 = arith.constant 0 : index
    %100 = vector.load %arg6[%c0_58, %c0_59, %c0_60] : memref<1x32x32xbf16, #tpu.memory_space<vmem>>, vector<1x32x32xbf16>
    %101 = vector.shape_cast %100 : vector<1x32x32xbf16> to vector<32x32xbf16>
    %cst_61 = arith.constant dense<0.000000e+00> : vector<16x32xf32>
    %102 = tpu.matmul %99, %101, %cst_61 {dimension_numbers = #tpu.dot_dimension_numbers<[1], [0], [0], [1], [0, 0, 1, 1], [], []>} : vector<16x32xbf16>, vector<32x32xbf16>, vector<16x32xf32> -> vector<16x32xf32>
    %103 = vector.broadcast %10 : vector<1x32xf32> to vector<16x32xf32>
    %104 = arith.addf %102, %103 : vector<16x32xf32>
    %105 = arith.addf %23, %104 : vector<16x32xf32>
    %cst_62 = arith.constant dense<0.000000e+00> : vector<16xf32>
    %106 = vector.multi_reduction <add>, %105, %cst_62 [1] : vector<16x32xf32> to vector<16xf32>
    %107 = vector.shape_cast %106 : vector<16xf32> to vector<16x1xf32>
    %cst_63 = arith.constant 3.200000e+01 : f32
    %108 = vector.broadcast %cst_63 : f32 to vector<16x1xf32>
    %109 = arith.divf %107, %108 : vector<16x1xf32>
    %110 = vector.broadcast %109 : vector<16x1xf32> to vector<16x32xf32>
    %111 = arith.subf %105, %110 : vector<16x32xf32>
    %112 = arith.mulf %111, %111 : vector<16x32xf32>
    %cst_64 = arith.constant dense<0.000000e+00> : vector<16xf32>
    %113 = vector.multi_reduction <add>, %112, %cst_64 [1] : vector<16x32xf32> to vector<16xf32>
    %114 = vector.shape_cast %113 : vector<16xf32> to vector<16x1xf32>
    %cst_65 = arith.constant 0.0322580636 : f32
    %115 = vector.broadcast %cst_65 : f32 to vector<16x1xf32>
    %116 = arith.mulf %114, %115 : vector<16x1xf32>
    %117 = math.sqrt %116 : vector<16x1xf32>
    %cst_66 = arith.constant 9.99999997E-7 : f32
    %118 = vector.broadcast %cst_66 : f32 to vector<16x1xf32>
    %119 = arith.addf %117, %118 : vector<16x1xf32>
    %120 = vector.broadcast %119 : vector<16x1xf32> to vector<16x32xf32>
    %121 = arith.divf %111, %120 : vector<16x32xf32>
    %122 = vector.broadcast %12 : vector<1x32xf32> to vector<16x32xf32>
    %123 = arith.mulf %122, %121 : vector<16x32xf32>
    %124 = vector.broadcast %14 : vector<1x32xf32> to vector<16x32xf32>
    %125 = arith.addf %123, %124 : vector<16x32xf32>
    %126 = arith.truncf %125 : vector<16x32xf32> to vector<16x32xbf16>
    %c0_67 = arith.constant 0 : index
    %c0_68 = arith.constant 0 : index
    %c0_69 = arith.constant 0 : index
    %127 = vector.load %arg7[%c0_67, %c0_68, %c0_69] : memref<1x32x64xbf16, #tpu.memory_space<vmem>>, vector<1x32x64xbf16>
    %128 = vector.shape_cast %127 : vector<1x32x64xbf16> to vector<32x64xbf16>
    %cst_70 = arith.constant dense<0.000000e+00> : vector<16x64xf32>
    %129 = tpu.matmul %126, %128, %cst_70 {dimension_numbers = #tpu.dot_dimension_numbers<[1], [0], [0], [1], [0, 0, 1, 1], [], []>} : vector<16x32xbf16>, vector<32x64xbf16>, vector<16x64xf32> -> vector<16x64xf32>
    %130 = vector.broadcast %16 : vector<1x64xf32> to vector<16x64xf32>
    %131 = arith.addf %129, %130 : vector<16x64xf32>
    %cst_71 = arith.constant 0.000000e+00 : f32
    %132 = vector.broadcast %cst_71 : f32 to vector<16x64xf32>
    %133 = arith.maximumf %131, %132 : vector<16x64xf32>
    %134 = arith.truncf %133 : vector<16x64xf32> to vector<16x64xbf16>
    %c0_72 = arith.constant 0 : index
    %c0_73 = arith.constant 0 : index
    %c0_74 = arith.constant 0 : index
    %135 = vector.load %arg8[%c0_72, %c0_73, %c0_74] : memref<1x64x32xbf16, #tpu.memory_space<vmem>>, vector<1x64x32xbf16>
    %136 = vector.shape_cast %135 : vector<1x64x32xbf16> to vector<64x32xbf16>
    %cst_75 = arith.constant dense<0.000000e+00> : vector<16x32xf32>
    %137 = tpu.matmul %134, %136, %cst_75 {dimension_numbers = #tpu.dot_dimension_numbers<[1], [0], [0], [1], [0, 0, 1, 1], [], []>} : vector<16x64xbf16>, vector<64x32xbf16>, vector<16x32xf32> -> vector<16x32xf32>
    %138 = vector.broadcast %18 : vector<1x32xf32> to vector<16x32xf32>
    %139 = arith.addf %137, %138 : vector<16x32xf32>
    %140 = arith.addf %125, %139 : vector<16x32xf32>
    %cst_76 = arith.constant dense<0.000000e+00> : vector<16xf32>
    %141 = vector.multi_reduction <add>, %140, %cst_76 [1] : vector<16x32xf32> to vector<16xf32>
    %142 = vector.shape_cast %141 : vector<16xf32> to vector<16x1xf32>
    %cst_77 = arith.constant 3.200000e+01 : f32
    %143 = vector.broadcast %cst_77 : f32 to vector<16x1xf32>
    %144 = arith.divf %142, %143 : vector<16x1xf32>
    %145 = vector.broadcast %144 : vector<16x1xf32> to vector<16x32xf32>
    %146 = arith.subf %140, %145 : vector<16x32xf32>
    %147 = arith.mulf %146, %146 : vector<16x32xf32>
    %cst_78 = arith.constant dense<0.000000e+00> : vector<16xf32>
    %148 = vector.multi_reduction <add>, %147, %cst_78 [1] : vector<16x32xf32> to vector<16xf32>
    %149 = vector.shape_cast %148 : vector<16xf32> to vector<16x1xf32>
    %cst_79 = arith.constant 0.0322580636 : f32
    %150 = vector.broadcast %cst_79 : f32 to vector<16x1xf32>
    %151 = arith.mulf %149, %150 : vector<16x1xf32>
    %152 = math.sqrt %151 : vector<16x1xf32>
    %cst_80 = arith.constant 9.99999997E-7 : f32
    %153 = vector.broadcast %cst_80 : f32 to vector<16x1xf32>
    %154 = arith.addf %152, %153 : vector<16x1xf32>
    %155 = vector.broadcast %154 : vector<16x1xf32> to vector<16x32xf32>
    %156 = arith.divf %146, %155 : vector<16x32xf32>
    %157 = vector.broadcast %20 : vector<1x32xf32> to vector<16x32xf32>
    %158 = arith.mulf %157, %156 : vector<16x32xf32>
    %159 = vector.broadcast %22 : vector<1x32xf32> to vector<16x32xf32>
    %160 = arith.addf %158, %159 : vector<16x32xf32>
    %c0_81 = arith.constant 0 : index
    %c0_82 = arith.constant 0 : index
    %161 = vector.load %arg12[%c0_81, %c0_82] : memref<16x32xf32, #tpu.memory_space<vmem>>, vector<16x32xf32>
    tpu.vector_store %arg12[%c0_81, %c0_82], %160 {strides = array<i32>} : memref<16x32xf32, #tpu.memory_space<vmem>>, vector<16x32xf32>,
    %c1_i32 = arith.constant 1 : i32
    %162 = arith.cmpi eq, %arg1, %c1_i32 : i32
    %163 = arith.extui %162 : i1 to i32
    %c0_i32_83 = arith.constant 0 : i32
    %164 = arith.cmpi ne, %163, %c0_i32_83 : i32
    scf.if %164 {
      %165 = vector.shape_cast %160 : vector<16x32xf32> to vector<2x8x32xf32>
      %c0_84 = arith.constant 0 : index
      %c0_85 = arith.constant 0 : index
      %c0_86 = arith.constant 0 : index
      %166 = vector.load %arg10[%c0_84, %c0_85, %c0_86] : memref<2x8x32xf32, #tpu.memory_space<vmem>>, vector<2x8x32xf32>
      tpu.vector_store %arg10[%c0_84, %c0_85, %c0_86], %165 {strides = array<i32>} : memref<2x8x32xf32, #tpu.memory_space<vmem>>, vector<2x8x32xf32>,
    } else {
    }
    return
  }
  func.func @transform_0(%arg0: i32, %arg1: i32) -> (i32, i32, i32) {
    %c0_i32 = arith.constant 0 : i32
    %c0_i32_0 = arith.constant 0 : i32
    %c0_i32_1 = arith.constant 0 : i32
    return %arg0, %c0_i32, %c0_i32_0 : i32, i32, i32
  }
  func.func @transform_1(%arg0: i32, %arg1: i32) -> (i32, i32, i32) {
    %c0_i32 = arith.constant 0 : i32
    %c0_i32_0 = arith.constant 0 : i32
    %c0_i32_1 = arith.constant 0 : i32
    return %arg1, %c0_i32, %c0_i32_0 : i32, i32, i32
  }
  func.func @transform_2(%arg0: i32, %arg1: i32) -> (i32, i32, i32) {
    %c0_i32 = arith.constant 0 : i32
    %c0_i32_0 = arith.constant 0 : i32
    %c0_i32_1 = arith.constant 0 : i32
    return %arg1, %c0_i32, %c0_i32_0 : i32, i32, i32
  }
  func.func @transform_3(%arg0: i32, %arg1: i32) -> (i32, i32, i32) {
    %c0_i32 = arith.constant 0 : i32
    %c0_i32_0 = arith.constant 0 : i32
    %c0_i32_1 = arith.constant 0 : i32
    return %arg1, %c0_i32, %c0_i32_0 : i32, i32, i32
  }
  func.func @transform_4(%arg0: i32, %arg1: i32) -> (i32, i32, i32) {
    %c0_i32 = arith.constant 0 : i32
    %c0_i32_0 = arith.constant 0 : i32
    %c0_i32_1 = arith.constant 0 : i32
    return %arg1, %c0_i32, %c0_i32_0 : i32, i32, i32
  }
  func.func @transform_5(%arg0: i32, %arg1: i32) -> (i32, i32, i32) {
    %c0_i32 = arith.constant 0 : i32
    %c0_i32_0 = arith.constant 0 : i32
    %c0_i32_1 = arith.constant 0 : i32
    return %arg1, %c0_i32, %c0_i32_0 : i32, i32, i32
  }
  func.func @transform_6(%arg0: i32, %arg1: i32) -> (i32, i32, i32) {
    %c0_i32 = arith.constant 0 : i32
    %c0_i32_0 = arith.constant 0 : i32
    %c0_i32_1 = arith.constant 0 : i32
    return %arg1, %c0_i32, %c0_i32_0 : i32, i32, i32
  }
  func.func @transform_7(%arg0: i32, %arg1: i32) -> (i32, i32, i32) {
    %c0_i32 = arith.constant 0 : i32
    %c0_i32_0 = arith.constant 0 : i32
    %c0_i32_1 = arith.constant 0 : i32
    return %arg1, %c0_i32, %c0_i32_0 : i32, i32, i32
  }
  func.func @transform_8(%arg0: i32, %arg1: i32) -> (i32, i32, i32) {
    %c0_i32 = arith.constant 0 : i32
    %c0_i32_0 = arith.constant 0 : i32
    %c0_i32_1 = arith.constant 0 : i32
    return %arg0, %c0_i32, %c0_i32_0 : i32, i32, i32
  }
  func.func @transform_9(%arg0: i32, %arg1: i32) -> (i32, i32, i32, i32, i32) {
    %c0_i32 = arith.constant 0 : i32
    %c0_i32_0 = arith.constant 0 : i32
    %c0_i32_1 = arith.constant 0 : i32
    %c0_i32_2 = arith.constant 0 : i32
    return %arg1, %arg0, %c0_i32, %c0_i32_0, %c0_i32_1 : i32, i32, i32, i32, i32
  }
}

</mosaic_0001>

<bundles_post_ra>
// kernel: tpu_custom_call.1
= control target key start
LH: loop header
LB: loop body
LE: loop exit
PB: predicated region body
PF: predicated region fallthrough
CT: control target
= control target key end

     0   :  { %s2889_s0 = inlined_call_operand.hbm [shape: f32[2,8,32], index: 0, kind: input, shape index: {}]   ;;  %s2890_s1 = inlined_call_operand.vmem [shape: bf16[2,32,32], index: 1, kind: input, shape index: {}]   ;;  %s2891_s2 = inlined_call_operand.vmem [shape: bf16[2,32,32], index: 2, kind: input, shape index: {}]   ;;  %s2892_s3 = inlined_call_operand.vmem [shape: bf16[2,32,32], index: 3, kind: input, shape index: {}]   ;;  %s2893_s4 = inlined_call_operand.hbm [shape: bf16[2,32,32], index: 4, kind: input, shape index: {}]   ;;  %s2894_s5 = inlined_call_operand.hbm [shape: bf16[2,32,64], index: 5, kind: input, shape index: {}]   ;;  %s2895_s6 = inlined_call_operand.vmem [shape: bf16[2,64,32], index: 6, kind: input, shape index: {}]   ;;  %s2896_s7 = inlined_call_operand.vmem [shape: f32[2,1,352], index: 7, kind: input, shape index: {}]   ;;  %s2897_s8 = inlined_call_operand.hbm [shape: f32[2,8,32], index: 8, kind: output, shape index: {0}]   ;;  %s2898_s9 = inlined_call_operand.hbm [shape: bf16[2,2,2,8,8], index: 9, kind: output, shape index: {1}]  }
   0x1   :  { %2914 = sst [smem:[#allocation23_spill]] %s2889_s0 }
   0x2   :  { %2915 = sst [smem:[#allocation24_spill]] %s2890_s1 }
   0x3   :  { %2916 = sst [smem:[#allocation25_spill]] %s2893_s4 }
   0x4   :  { %2917 = sst [smem:[#allocation26_spill]] %s2894_s5 }
   0x5   :  { %15 = vsyncpa [#allocation5], 0 }
   0x6   :  { %16 = vsyncpa [#allocation8], 0 }
   0x7   :  { %18 = vsyncpa [#allocation8 + $0x1], 0 }
   0x8   :  { %19 = vsyncpa [#allocation6], 0 }
   0x9   :  { %20 = vsyncpa [#allocation12], 0 }
   0xa   :  { %22 = vsyncpa [#allocation12 + $0x1], 0  ;;  %s2399_s30 = smov 0   ;;  %s2401_s10 = smov 0  }
   0xb   :  { %s2403_s11 = smov 0   ;;  %s2405_s12 = smov 0  }
   0xc   :  { %s2407_s13 = smov 0   ;;  %s2409_s14 = smov 0  }
   0xd LB: > { %2918 = sst [smem:[#allocation17_spill]] %s2316_s11  ;;  %s37_s15 = sadd.s32 1, %s2324_s13  ;;  %s2328_s14 = sphi %s2409_s14, %s28_s14   ;;  %s2324_s13 = sphi %s2407_s13, %s2959_s13   ;;  %s2320_s12 = sphi %s2405_s12, %s2958_s12   ;;  %s2316_s11 = sphi %s2403_s11, %s2962_s11   ;;  %s2312_s10 = sphi %s2401_s10, %s2961_s10   ;;  %s2308_s30 = sphi %s2399_s30, %s2960_s30  }
   0xe   : > { %2919 = sst [smem:[#allocation18_spill]] %s2324_s13  ;;  %s151_s16 = sadd.s32 1, %s2316_s11 }
   0xf   : > { %2920 = sst [smem:[#allocation19_spill]] %s2328_s14  ;;  %p38_p0 = scmp.ge.s32.totalorder %s37_s15, 2 }
  0x10   : > { %p158_p1 = scmp.ne.s32.totalorder %s2316_s11, %s2312_s10  ;;  %p159_p2 = scmp.eq.s32.totalorder %s2328_s14, 0 }
  0x11   : > { %s2964_s15 = smov (%p38_p0, %s37_s15), 0  ;;  %p2009_p5 = scmp.lt.s32.totalorder %s2328_s14, 2 }
  0x12   : > { %2921 = sst [smem:[#allocation20_spill]] %s2964_s15  ;;  %p160_p4 = por %p159_p2, %p158_p1 }
  0x13   : > { %s148_s17 = ssub.s32 %s2324_s13, %s2964_s15  ;;  %s360_s18 = sand.u32 1, %s2328_s14  }
  0x14   : > { %p149_p6 = scmp.eq.s32.totalorder %s148_s17, 0  ;;  %s362_s19 = sand.u32 1, %s2316_s11  }
  0x15   : > { %s2899_s20 = sshll.u32 %s2324_s13, 8  ;;  %s2449_s22 = sshll.u32 %s362_s19, 4 }
  0x16   : > { %s2447_s21 = scalar_select %p149_p6, %s2316_s11, %s151_s16  }
  0x17   : > { %s2923_s4 = sld [smem:[#allocation25_spill]]  ;;  %p2458_p7 = pnand %p2009_p5, %p160_p4 }
  0x18   : > { %2922 = sst [smem:[#allocation21_spill]] %s2447_s21  ;;  %s364_s27 = scalar_lea.vmem [#allocation7], %s2449_s22 }
  0x19   : > { %s371_s28 = sshll.u32 %s364_s27, 4  ;;  %s2465_s29 = scalar_lea.sflag [#allocation8], %s360_s18  ;;  %s2463_s28 = int_to_ptr.vmem [resolvable:$true] %s371_s28 }
  0x1a   : > { %p2126_p9 = pneg %p2458_p7 }
  0x1d   : > { %s2456_s25 = scalar_lea.hbm %s2923_s4, %s2899_s20  ;;  %s2129_s23 = scalar_lea.hbm %s2923_s4, 512 }
  0x1e   : > { %s2124_s16 = scalar_lea.hbm %s2456_s25, 256  ;;  %p2130_p12 = scmp.lt.u32.totalorder %s2456_s25, %s2923_s4 }
  0x1f   : > { %p2125_p8 = scmp.ne.s32.totalorder %s2456_s25, %s2124_s16  ;;  %p2131_p13 = scmp.lt.u32.totalorder %s2129_s23, %s2124_s16 }
  0x20   : > { %p2133_p2 = scmp.lt.u32.totalorder %s2124_s16, %s2456_s25 }
  0x21   : > { %p2127_p10 = pnand %p2126_p9, %p2125_p8  ;;  %p2132_p0 = por %p2131_p13, %p2130_p12 }
  0x23   : > { %p2128_p11 = pneg %p2127_p10  ;;  %p2134_p4 = por %p2133_p2, %p2132_p0 }
  0x25   : > { %p2135_p5 = pnand %p2134_p4, %p2128_p11 }
  0x27   : > { %2138 = shalt.err (!%p2135_p5)
}
  0x28   : > { %s2139_s18 = scalar_lea.vmem %s2463_s28, 256  ;;  %s2330_s27 = smov [#allocation7]  }
  0x29   : > { %p2140_p6 = scmp.ne.s32.totalorder %s2463_s28, %s2139_s18  ;;  %s2144_s17 = sshll.u32 %s2330_s27, 4  ;;  %s2145_s17 = int_to_ptr.vmem [resolvable:$false] %s2144_s17 }
  0x2a   : > { %s2146_s20 = scalar_lea.vmem %s2145_s17, 512  ;;  %p2147_p3 = scmp.lt.s32.totalorder %s2463_s28, %s2145_s17 }
  0x2b   : > { %p2142_p8 = pnand %p2140_p6, %p2126_p9  ;;  %p2148_p12 = scmp.lt.s32.totalorder %s2146_s20, %s2139_s18 }
  0x2d   : > { %p2143_p10 = pneg %p2142_p8  ;;  %p2149_p13 = por %p2148_p12, %p2147_p3 }
  0x2f   : > { %p2150_p0 = pnand %p2149_p13, %p2143_p10 }
  0x31   : > { %2153 = shalt.err (!%p2150_p0)
}
  0x32   : > { %s2901_s16 = smov 64   ;;  %s2902_s19 = smov 4  }
  0x33   : > { %2000 = dma.hbm_to_vmem [thread:$0]  (!%p2458_p7), %s2456_s25, 256, %s2463_s28, %s2465_s29, %s2901_s16, %s2901_s16, %s2902_s19  }
  0x34   : > { %s2925_s23 = sshll.u32 %s2324_s13, 8  ;;  %s2926_s5 = sld [smem:[#allocation26_spill]] }
  0x35   : > { %s385_s17 = scalar_lea.vmem [#allocation9], %s2449_s22  ;;  %s2507_s4 = sadd.s32 4294967295, %s2328_s14  }
  0x36   : > { %s392_s20 = sshll.u32 %s385_s17, 4  ;;  %s1770_s15 = sadd.s32 4294967294, %s2328_s14   ;;  %s2504_s20 = int_to_ptr.vmem [resolvable:$true] %s392_s20 }
  0x37   : > { %p164_p3 = scmp.ne.s32.totalorder %s2312_s10, %s2308_s30  ;;  %p2905_p11 = scmp.eq.s32.totalorder %s2507_s4, 0 }
  0x38   : > { %p2904_p2 = scmp.eq.s32.totalorder %s2507_s4, 1  ;;  %p300_p4 = scmp.eq.s32.totalorder %s1770_s15, 1 }
  0x39   : > { %p1771_p5 = scmp.ge.s32.totalorder %s2328_s14, 1  ;;  %p2517_p6 = por %p2905_p11, %p164_p3 }
  0x3a   : > { %s2501_s27 = scalar_lea.hbm %s2926_s5, %s2925_s23  ;;  %p2526_p8 = por %p2904_p2, %p158_p1 }
  0x3b   : > { %s2927_s22 = scalar_select %p2517_p6, 1, 0 }
  0x3c   : > { %s2928_s25 = scalar_select %p2526_p8, 1, 0 }
  0x3d   : > { %p2530_p10 = por %p300_p4, %p164_p3  ;;  %p307_p12 = scmp.lt.s32.totalorder %s2328_s14, 3 }
  0x3e   : > { %s2333_s23 = smov [#allocation4]   ;;  %s2154_s18 = scalar_lea.hbm %s2501_s27, 256 }
  0x3f   : > { %s2929_s28 = scalar_select %p2530_p10, 1, 0 }
  0x40   : > { %p2535_p13 = pnand %p1771_p5, %p307_p12  ;;  %s322_s24 = sshll.u32 %s2333_s23, 4  ;;  %s2539_s24 = int_to_ptr.vmem [resolvable:$true] %s322_s24 }
  0x41   : > { %2930 = sst [smem:[#allocation22_spill]] %s2929_s28  ;;  %p2155_p0 = scmp.ne.s32.totalorder %s2501_s27, %s2154_s18 }
  0x42   : > { %s2931_s15 = scalar_select %p2535_p13, 1, 0 }
  0x43   : > { %p2157_p3 = pnand %p2155_p0, %p2126_p9  ;;  %s2159_s19 = scalar_lea.hbm %s2926_s5, 512 }
  0x44   : > { %p2160_p5 = scmp.lt.u32.totalorder %s2501_s27, %s2926_s5  ;;  %p2161_p12 = scmp.lt.u32.totalorder %s2159_s19, %s2154_s18 }
  0x45   : > { %p2158_p4 = pneg %p2157_p3  ;;  %p2163_p11 = scmp.lt.u32.totalorder %s2154_s18, %s2501_s27 }
  0x46   : > { %p2162_p2 = por %p2161_p12, %p2160_p5 }
  0x48   : > { %p2164_p10 = por %p2163_p11, %p2162_p2 }
  0x4a   : > { %p2165_p8 = pnand %p2164_p10, %p2158_p4 }
  0x4c   : > { %2168 = shalt.err (!%p2165_p8)
}
  0x4d   : > { %s2169_s23 = scalar_lea.vmem %s2504_s20, 256  ;;  %s2334_s16 = smov [#allocation9]  }
  0x4e   : > { %p2170_p0 = scmp.ne.s32.totalorder %s2504_s20, %s2169_s23  ;;  %s2174_s17 = sshll.u32 %s2334_s16, 4  ;;  %s2175_s17 = int_to_ptr.vmem [resolvable:$false] %s2174_s17 }
  0x4f   : > { %s2176_s13 = scalar_lea.vmem %s2175_s17, 512  ;;  %p2177_p6 = scmp.lt.s32.totalorder %s2504_s20, %s2175_s17 }
  0x50   : > { %p2172_p3 = pnand %p2170_p0, %p2126_p9  ;;  %p2178_p5 = scmp.lt.s32.totalorder %s2176_s13, %s2169_s23 }
  0x52   : > { %p2173_p1 = pneg %p2172_p3  ;;  %p2179_p12 = por %p2178_p5, %p2177_p6 }
  0x54   : > { %p2180_p11 = pnand %p2179_p12, %p2173_p1 }
  0x56   : > { %2183 = shalt.err (!%p2180_p11)
}
  0x57   : > { %s2932_s21 = smov 4   ;;  %s2933_s19 = smov 64  }
  0x58   : > { %2003 = dma.hbm_to_vmem [thread:$0]  (!%p2458_p7), %s2501_s27, 256, %s2504_s20, %s2465_s29, %s2933_s19, %s2933_s19, %s2932_s21  }
  0x59   : > { %p2934_p9 = scmp.eq.s32.totalorder %s2507_s4, 0  ;;  %p2935_p2 = pneg %p2535_p13 }
  0x5a   : > { %s2937_s0 = sld [smem:[#allocation23_spill]] }
  0x5b   : > { %p2575_p8 = pnand %p2935_p2, %p2934_p9 }
  0x5d   : > { %p2186_p10 = pneg %p2575_p8 }
  0x60   : > { %s2184_s26 = scalar_lea.hbm %s2937_s0, 256 }
  0x61   : > { %p2185_p6 = scmp.ne.s32.totalorder %s2937_s0, %s2184_s26  ;;  %p2191_p4 = scmp.lt.u32.totalorder %s2184_s26, %s2937_s0 }
  0x63   : > { %p2187_p1 = pnand %p2186_p10, %p2185_p6 }
  0x65   : > { %p2188_p7 = pneg %p2187_p1 }
  0x67   : > { %p2193_p0 = pnand %p2191_p4, %p2188_p7 }
  0x69   : > { %2196 = shalt.err (!%p2193_p0)
}
  0x6a   : > { %s2197_s20 = scalar_lea.vmem %s2539_s24, 256  ;;  %p2205_p11 = scmp.lt.s32.totalorder %s2539_s24, %s2539_s24 }
  0x6b   : > { %p2198_p3 = scmp.ne.s32.totalorder %s2539_s24, %s2197_s20  ;;  %p2206_p9 = scmp.lt.s32.totalorder %s2197_s20, %s2197_s20 }
  0x6d   : > { %p2200_p5 = pnand %p2198_p3, %p2186_p10  ;;  %p2207_p2 = por %p2206_p9, %p2205_p11 }
  0x6f   : > { %p2201_p12 = pneg %p2200_p5 }
  0x71   : > { %p2208_p13 = pnand %p2207_p2, %p2201_p12 }
  0x73   : > { %2211 = shalt.err (!%p2208_p13)
}
  0x74   : > { %s2335_s21 = smov 128   ;;  %s2336_s19 = smov 8  }
  0x75   : > { %1996 = dma.hbm_to_vmem [thread:$0]  (!%p2575_p8), %s2937_s0, 256, %s2539_s24, [#allocation5], %s2335_s21, %s2335_s21, %s2336_s19  }
  0x76   : > { %p2938_p6 = scmp.ne.s32.totalorder %s2931_s15, 0 }
  0x77   : > { %p2939_p10 = scmp.eq.s32.totalorder (!%p2938_p6), %s2507_s4, 0 }
  0x78   : > { %419 = sbr.rel (%p2938_p6) target bundleno = 3387 (0xd3b), region = 52 }
  0x7f   : > { %2291 = dma.done.wait (%p2939_p10), [#allocation5], 256   ;;  %p2940_p1 = pmov %p2939_p10 }
  0x80   : > { %s425_s26 = sand.u32 1, %s2507_s4   ;;  %s2909_s17 = sand.u32 1, %s2312_s10  }
  0x81   : > { %2293 = vsyncadd (%p2940_p1), [#allocation5], 4294967040  ;;  %s2610_s18 = sshll.u32 %s2909_s17, 4  ;;  %s426_s24 = scalar_lea.sflag [#allocation8], %s425_s26 }
  0x82   : > { %p2941_p13 = scmp.ne.s32.totalorder %s2927_s22, 0 }
  0x84   : > { %2295 = dma.done.wait (%p2941_p13), %s426_s24, 512  }
  0x85   : > { %2297 = vsyncadd (%p2941_p13), %s426_s24, 4294966784  ;;  %p503_p8 = scmp.lt.s32.totalorder %s2320_s12, 1  ;;  %s2942_s1 = sld [smem:[#allocation24_spill]] }
  0x86   : > { %s438_s21 = scalar_lea.vmem [#allocation9], %s2610_s18  ;;  %p1793_p7 = scmp.ne.s32.totalorder %s2320_s12, 0 }
  0x87   : > { %s504_s15 = scalar_select %p503_p8, %s2320_s12, 1 }
  0x88   : > { %533 = sbr.rel (%p1793_p7) target bundleno = 143 (0x8f), region = 68  ;;  %v534_v0 = vld [vmem:[#allocation4] sm:$0xff] (!%p1793_p7)  ;;  %vm536_vm0 = vcmask (!%p1793_p7), 261120   ;;  %v535_v1 = vld [vmem:[#allocation4 + $0x8] sm:$0xff] (!%p1793_p7) }
  0x89   : > { %s1837_s29 = sshll.u32 %s504_s15, 4  ;;  %s1840_s27 = sshll.u32 %s504_s15, 5  ;;  %537 = vst.msk [vmem:[#allocation2] sm:$0xff] (!%p1793_p7), %vm536_vm0, %v534_v0  ;;  %538 = vst.msk [vmem:[#allocation2 + $0x8] sm:$0xff] (!%p1793_p7), %vm536_vm0, %v535_v1 }
  0x8a   : > { %s512_s26 = scalar_lea.vmem %s2891_s2, %s1837_s29  ;;  %s2628_s22 = scalar_lea.vmem %s2892_s3, %s1837_s29 }
  0x8b   : > { %s507_s19 = scalar_lea.vmem %s2942_s1, %s1837_s29  ;;  %s2633_s5 = scalar_lea.vmem %s2895_s6, %s1840_s27 }
  0x8c   : > { %s1978_s11 = smul.u32 3, %s504_s15  ;;  %s2642_s1 = scalar_lea.vmem [#allocation11], %s2610_s18 }
  0x8e   : > { %s2638_s20 = scalar_lea.vmem %s2896_s7, %s1978_s11 }
  0x8f PF: > { %v2078_v2 = vld [vmem:[%s512_s26] sm:$0xff]   ;;  %v2337_v3 = vmov 0.0   ;;  %v2079_v4 = vld [vmem:[%s512_s26 + $0x8] sm:$0xff]   ;;  %vm2338_vm1 = vmmov 0   ;;  %s2339_s0 = smov 96   ;;  %vm567_vm2 = vcmask 261120  }
  0x90   : > { %1886 = vmatprep.subr.bf16.mxu1 %v2337_v3  ;;  %1878 = vmatprep.subr.bf16.mxu0 %v2337_v3  ;;  %v2080_v5 = vld [vmem:[%s507_s19] sm:$0xff]   ;;  %v2652_v7 = vld [vmem:[#allocation2 + $0x8] sm:$0xff]  ;;  %vm738_vm3 = vcmask 130048   ;;  %vm833_vm4 = vcmask 64512   ;;  %s2340_s11 = smov 64   ;;  %s2341_s14 = smov 112  }
  0x91   : > { %1887 = vmatpush3.bf16.msra.mxu1 %v2078_v2  ;;  %1890 = vmatprep.mubr.msk.bf16.mxu1 %vm2338_vm1, %v2337_v3  ;;  %v2650_v6 = vld [vmem:[#allocation2] sm:$0xff]  ;;  %v2081_v8 = vld [vmem:[%s507_s19 + $0x8] sm:$0xff]   ;;  %vm864_vm5 = vcmask 1043456   ;;  %vm858_vm6 = vcmask 60416   ;;  %s2943_s28 = scalar_lea.vmem [#allocation7], %s2610_s18  ;;  %s2342_s13 = smov 16  }
  0x92   : > { %1888 = vmatprep.subr.bf16.mxu1 %v2337_v3  ;;  %1882 = vmatprep.mubr.msk.bf16.mxu0 %vm2338_vm1, %v2337_v3  ;;  %v2657_v9 = vld [vmem:[%s2638_s20] ss:$0 sm:$0xff]  ;;  %v544_v10 = vpack.c.bf16 %v2652_v7, %v2650_v6  ;;  %v2083_v12 = vld [vmem:[%s2628_s22 + $0x8] sm:$0xff]   ;;  %s2944_s17 = smov %s2943_s28  ;;  %s2343_s15 = smov 32   ;;  %vm1195_vm7 = vcmask 261248   ;;  %vm1425_vm12 = vcmask 523264  }
  0x93   : > { %1879 = vmatpush3.bf16.msra.mxu0 %v2080_v5  ;;  %628 = vrot.lane.b32.xlu0 %v2657_v9, %s2339_s0  ;;  %v2082_v11 = vld [vmem:[%s2628_s22] sm:$0xff]   ;;  %p1827_p4 = scmp.ne.s32.totalorder %s2320_s12, 1 }
  0x94   : > { %1880 = vmatprep.subr.bf16.mxu0 %v2337_v3 }
  0x95   : > { %1889 = vmatpush3.bf16.msra.mxu1 %v2079_v4 }
  0x96   : > { %1902 = vmatprep.subr.bf16.mxu1 %v2337_v3 }
  0x97   : > { %1881 = vmatpush3.bf16.msra.mxu0 %v2081_v8 }
  0x98   : > { %1891 = vmatmul.mubr.msk.bf16.vlgmr.msra.gmra.mrb[0].mxu1 %vm567_vm2, %v544_v10  ;;  %1894 = vmatprep.subr.bf16.mxu0 %v2337_v3 }
  0x99   : > { %1904 = vmatprep.mubr.msk.bf16.mxu1 %vm2338_vm1, %v2337_v3 }
  0x9a   : > { %1883 = vmatmul.mubr.msk.bf16.vlgmr.msra.gmra.mrb[0].mxu0 %vm567_vm2, %v544_v10 }
  0x9b   : > { %1895 = vmatpush3.bf16.msra.mxu0 %v2082_v11  ;;  %1898 = vmatprep.mubr.msk.bf16.mxu0 %vm2338_vm1, %v2337_v3 }
  0x9c   : > { %1896 = vmatprep.subr.bf16.mxu0 %v2337_v3 }
  0x9f   : > { %1897 = vmatpush3.bf16.msra.mxu0 %v2083_v12 }
  0xa0   : > { %1908 = vmatprep.subr.bf16.mxu0 %v2337_v3 }
  0xa2   : > { %1899 = vmatmul.mubr.msk.bf16.vlgmr.msra.gmra.mrb[4].mxu0 %vm567_vm2, %v544_v10 }
  0xa3   : > { %1910 = vmatprep.mubr.msk.bf16.mxu0 %vm2338_vm1, %v2337_v3 }
 0x105   : > { %v629_v13 = vpop.permute.xlu0 %628 }
 0x16b   : > { %v665_v14 = vpop.f32.mrb[0].mxu1 }
 0x16c   : > { %v666_v15 = vadd.f32 %v665_v14, %v629_v13  ;;  %v1892_v16 = vpop.f32.mrb[1].mxu1 }
 0x16d   : > { %v668_v17 = vpop.f32.mrb[2].mxu1  ;;  %v605_v18 = vpop.f32.mrb[0].mxu0 }
 0x16e   : > { %v734_v19 = vpack.c.bf16 %v666_v15, %v666_v15  ;;  %v669_v20 = vadd.f32 %v668_v17, %v629_v13  ;;  %v1893_v21 = vpop.f32.mrb[3].mxu1  ;;  %v1884_v22 = vpop.f32.mrb[1].mxu0  ;;  %v606_v25 = vadd.f32 %v2657_v9, %v605_v18 }
 0x16f   : > { %v608_v23 = vpop.f32.mrb[2].mxu0 }
 0x170   : > { %v2679_v24 = vpack.c.bf16 %v669_v20, %v669_v20  ;;  %v743_v26 = vsel %vm738_vm3, %v734_v19, 0  ;;  %v1885_v27 = vpop.f32.mrb[3].mxu0  ;;  %v732_v29 = vpack.c.bf16 %v606_v25, %v606_v25  ;;  %v609_v30 = vadd.f32 %v2657_v9, %v608_v23 }
 0x171   : > { %1903 = vmatpush3.bf16.xpose.msra.mxu1 %v743_v26 }
 0x172   : > { %v789_v28 = vsel %vm738_vm3, %v2679_v24, 0  ;;  %1914 = vmatprep.subr.bf16.mxu1 %v2337_v3  ;;  %v733_v34 = vpack.c.bf16 %v609_v30, %v609_v30 }
 0x173   : > { %1909 = vmatpush3.bf16.xpose.msra.mxu0 %v789_v28 }
 0x174   : > { %1920 = vmatprep.subr.bf16.mxu0 %v2337_v3 }
 0x175   : > { %v725_v31 = vpop.f32.mrb[4].mxu0 }
 0x176   : > { %v1900_v32 = vpop.f32.mrb[5].mxu0 }
 0x177   : > { %v728_v33 = vpop.f32.mrb[6].mxu0 }
 0x178   : > { %1905 = vmatmul.mubr.msk.bf16.vlgmr.msra.gmra.mrb[4].mxu1 %vm738_vm3, %v732_v29  ;;  %v1901_v35 = vpop.f32.mrb[7].mxu0 }
 0x179   : > { %1916 = vmatprep.mubr.msk.bf16.mxu1 %vm2338_vm1, %v2337_v3 }
 0x17a   : > { %1911 = vmatmul.mubr.msk.bf16.vlgmr.msra.gmra.mrb[8].mxu0 %vm738_vm3, %v733_v34 }
 0x17b   : > { %1922 = vmatprep.mubr.msk.bf16.mxu0 %vm2338_vm1, %v2337_v3 }
 0x24b   : > { %v779_v36 = vpop.f32.mrb[4].mxu1 }
 0x24c   : > { %v831_v37 = vmul.f32 0.25, %v779_v36  ;;  %v1906_v38 = vpop.f32.mrb[5].mxu1 }
 0x24d   : > { %v782_v39 = vpop.f32.mrb[6].mxu1  ;;  %v825_v40 = vpop.f32.mrb[8].mxu0 }
 0x24e   : > { %v832_v41 = vmul.f32 0.25, %v825_v40  ;;  %v1907_v42 = vpop.f32.mrb[7].mxu1  ;;  %v1912_v43 = vpop.f32.mrb[9].mxu0  ;;  %v834_v44 = vsel %vm833_vm4, %v831_v37, -inf }
 0x24f   : > { %v828_v45 = vpop.f32.mrb[10].mxu0  ;;  %835 = vmax.xlane.f32.xlu0 %v834_v44 }
 0x250   : > { %v1913_v46 = vpop.f32.mrb[11].mxu0  ;;  %v837_v47 = vsel %vm833_vm4, %v832_v41, -inf }
 0x251   : > { %838 = vmax.xlane.f32.xlu1 %v837_v47 }
 0x262   : > { %688 = vrot.lane.b32.xlu1 %v2657_v9, %s2340_s11 }
 0x265   : > { %957 = vrot.lane.b32.xlu0 %v732_v29, %s2341_s14 }
 0x266   : > { %960 = vrot.lane.b32.xlu1 %v734_v19, %s2341_s14 }
 0x2dc   : > { %v836_v48 = vpop.xlane.xlu0 %835 }
 0x2dd   : > { %v840_v49 = vsub.f32 %v831_v37, %v836_v48 }
 0x2de   : > { %v839_v50 = vpop.xlane.xlu1 %838 }
 0x2df   : > { %v842_v51 = vmul.f32 1.442695, %v840_v49  ;;  %v841_v52 = vsub.f32 %v832_v41, %v839_v50 }
 0x2e0   : > { %v958_v17 = vpop.permute.xlu0 %957 }
 0x2e1   : > { %2092 = vpow2.f32 %v842_v51  ;;  %v844_v53 = vmul.f32 1.442695, %v841_v52 }
 0x2e2   : > { %v689_v54 = vpop.permute.xlu1 %688 }
 0x2e3   : > { %2094 = vpow2.f32 %v844_v53  ;;  %v726_v55 = vadd.f32 %v725_v31, %v689_v54  ;;  %v729_v56 = vadd.f32 %v728_v33, %v689_v54 }
 0x2e5   : > { %v2700_v57 = vpack.c.bf16 %v726_v55, %v726_v55  ;;  %v2702_v58 = vpack.c.bf16 %v729_v56, %v729_v56 }
 0x2e6   : > { %v961_v1 = vpop.permute.xlu1 %960 }
 0x2e7   : > { %v866_v59 = vsel %vm864_vm5, %v2700_v57, 0  ;;  %v912_v60 = vsel %vm864_vm5, %v2702_v58, 0  ;;  %v966_v12 = vsel %vm738_vm3, %v961_v1, 0 }
 0x2e8   : > { %1915 = vmatpush3.bf16.msra.mxu1 %v866_v59  ;;  %1921 = vmatpush3.bf16.msra.mxu0 %v912_v60 }
 0x2e9   : > { %1926 = vmatprep.subr.bf16.mxu1 %v2337_v3  ;;  %1932 = vmatprep.subr.bf16.mxu0 %v2337_v3 }
 0x2eb   : > { %v2093_v61 = vpop.eup %2092 }
 0x2ec   : > { %v846_v62 = vsel %vm833_vm4, %v2093_v61, 0.0 }
 0x2ed   : > { %v2095_v63 = vpop.eup %2094  ;;  %847 = vadd.xlane.f32.xlu1 %v846_v62  ;;  %v2085_v62 = vld [vmem:[%s2944_s17 + $0x8] sm:$0xff]  }
 0x2ee   : > { %v849_v0 = vsel %vm833_vm4, %v2095_v63, 0.0 }
 0x2f1   : > { %850 = vadd.xlane.f32.xlu1 %v849_v0 }
 0x302   : > { %1012 = vrot.lane.b32.xlu1 %v2679_v24, %s2341_s14 }
 0x306   : > { %1009 = vrot.lane.b32.xlu1 %v733_v34, %s2341_s14 }
 0x37a   : > { %v848_v2 = vpop.xlane.xlu1 %847 }
 0x37b   : > { %2096 = vrcp.f32 %v848_v2 }
 0x37e   : > { %v851_v4 = vpop.xlane.xlu1 %850 }
 0x37f   : > { %2098 = vrcp.f32 %v851_v4 }
 0x382   : > { %v1013_v14 = vpop.permute.xlu1 %1012 }
 0x383   : > { %v1018_v16 = vsel %vm738_vm3, %v1013_v14, 0 }
 0x385   : > { %v2097_v5 = vpop.eup %2096 }
 0x386   : > { %v853_v8 = vmul.f32 %v2097_v5, %v2093_v61  ;;  %v1010_v18 = vpop.permute.xlu1 %1009  ;;  %v2084_v61 = vld [vmem:[%s2943_s28] sm:$0xff]  }
 0x388   : > { %v856_v10 = vpack.c.bf16 %v853_v8, %v853_v8 }
 0x389   : > { %v2099_v11 = vpop.eup %2098 }
 0x38a   : > { %v855_v13 = vmul.f32 %v2099_v11, %v2095_v63  ;;  %859 = vst.msk [vmem:[%s2642_s1] sm:$0xf] %vm858_vm6, %v856_v10  ;;  %1917 = vmatmul.mubr.msk.bf16.vlgmr.msra.gmra.mrb[8].mxu1 %vm833_vm4, %v856_v10 }
 0x38b   : > { %1927 = vmatpush3.bf16.xpose.msra.mxu1 %v966_v12  ;;  %1928 = vmatprep.mubr.msk.bf16.mxu1 %vm2338_vm1, %v2337_v3 }
 0x38c   : > { %v857_v15 = vpack.c.bf16 %v855_v13, %v855_v13  ;;  %1938 = vmatprep.subr.bf16.mxu1 %v2337_v3 }
 0x38e   : > { %860 = vst.msk [vmem:[%s2642_s1 + $0x8] sm:$0xf] %vm858_vm6, %v857_v15  ;;  %1923 = vmatmul.mubr.msk.bf16.vlgmr.msra.gmra.mrb[12].mxu0 %vm833_vm4, %v857_v15 }
 0x38f   : > { %1933 = vmatpush3.bf16.xpose.msra.mxu0 %v1018_v16  ;;  %1934 = vmatprep.mubr.msk.bf16.mxu0 %vm2338_vm1, %v2337_v3 }
 0x390   : > { %1944 = vmatprep.subr.bf16.mxu0 %v2337_v3 }
 0x392   : > { %1929 = vmatmul.mubr.msk.bf16.vlgmr.msra.gmra.mrb[12].mxu1 %vm738_vm3, %v958_v17 }
 0x393   : > { %1940 = vmatprep.mubr.msk.bf16.mxu1 %vm2338_vm1, %v2337_v3 }
 0x396   : > { %1935 = vmatmul.mubr.msk.bf16.vlgmr.msra.gmra.mrb[16].mxu0 %vm738_vm3, %v1010_v18 }
 0x397   : > { %1946 = vmatprep.mubr.msk.bf16.mxu0 %vm2338_vm1, %v2337_v3 }
 0x45d   : > { %v902_v19 = vpop.f32.mrb[8].mxu1 }
 0x45e   : > { %954 = vst.msk [vmem:[#allocation3] sm:$0xff] %vm738_vm3, %v902_v19  ;;  %v1918_v20 = vpop.f32.mrb[9].mxu1 }
 0x45f   : > { %v905_v21 = vpop.f32.mrb[10].mxu1 }
 0x460   : > { %v1919_v22 = vpop.f32.mrb[11].mxu1 }
 0x461   : > { %v948_v23 = vpop.f32.mrb[12].mxu0 }
 0x462   : > { %955 = vst.msk [vmem:[#allocation3 + $0x8] sm:$0xff] %vm738_vm3, %v948_v23  ;;  %v1924_v24 = vpop.f32.mrb[13].mxu0 }
 0x463   : > { %v951_v25 = vpop.f32.mrb[14].mxu0 }
 0x464   : > { %v1925_v26 = vpop.f32.mrb[15].mxu0 }
 0x465   : > { %v1002_v27 = vpop.f32.mrb[12].mxu1 }
 0x466   : > { %v1060_v28 = vmul.f32 0.25, %v1002_v27  ;;  %v1930_v29 = vpop.f32.mrb[13].mxu1 }
 0x467   : > { %v1005_v30 = vpop.f32.mrb[14].mxu1 }
 0x468   : > { %v1931_v31 = vpop.f32.mrb[15].mxu1  ;;  %v1062_v32 = vsel %vm833_vm4, %v1060_v28, -inf }
 0x469   : > { %v1054_v33 = vpop.f32.mrb[16].mxu0  ;;  %1063 = vmax.xlane.f32.xlu1 %v1062_v32 }
 0x46a   : > { %v1061_v34 = vmul.f32 0.25, %v1054_v33  ;;  %v1936_v35 = vpop.f32.mrb[17].mxu0 }
 0x46b   : > { %v1057_v36 = vpop.f32.mrb[18].mxu0  ;;  %v2086_v35 = vld [vmem:[%s438_s21] sm:$0xff]  }
 0x46c   : > { %v1937_v37 = vpop.f32.mrb[19].mxu0  ;;  %v1065_v38 = vsel %vm833_vm4, %v1061_v34, -inf  ;;  %v2087_v36 = vld [vmem:[%s438_s21 + $0x8] sm:$0xff]  }
 0x46d   : > { %1066 = vmax.xlane.f32.xlu0 %v1065_v38  ;;  %v2088_v37 = vld [vmem:[%s2633_s5] sm:$0xff]   ;;  %v2089_v38 = vld [vmem:[%s2633_s5 + $0x8] sm:$0xff]  }
 0x483   : > { %1139 = vrot.lane.b32.xlu0 %v2702_v58, %s2341_s14 }
 0x487   : > { %1217 = vrot.lane.b32.xlu0 %v2657_v9, %s2343_s15 }
 0x4f6   : > { %v1064_v39 = vpop.xlane.xlu1 %1063 }
 0x4f7   : > { %v1068_v40 = vsub.f32 %v1060_v28, %v1064_v39 }
 0x4f9   : > { %v1070_v41 = vmul.f32 1.442695, %v1068_v40 }
 0x4fa   : > { %v1067_v42 = vpop.xlane.xlu0 %1066 }
 0x4fb   : > { %2100 = vpow2.f32 %v1070_v41  ;;  %v1069_v43 = vsub.f32 %v1061_v34, %v1067_v42  ;;  %v1817_v34 = vld [vmem:[%s2638_s20 + $0x1] ss:$0 sm:$0xff] }
 0x4fd   : > { %v1072_v44 = vmul.f32 1.442695, %v1069_v43 }
 0x4fe   : > { %v1140_v45 = vpop.permute.xlu0 %1139 }
 0x4ff   : > { %2102 = vpow2.f32 %v1072_v44  ;;  %v1145_v46 = vsel %vm864_vm5, %v1140_v45, 0 }
 0x500   : > { %1945 = vmatpush3.bf16.msra.mxu0 %v1145_v46 }
 0x501   : > { %1958 = vmatprep.subr.bf16.mxu0 %v2337_v3 }
 0x502   : > { %v1218_v16 = vpop.permute.xlu0 %1217 }
 0x505   : > { %v2101_v47 = vpop.eup %2100 }
 0x506   : > { %v1074_v48 = vsel %vm833_vm4, %v2101_v47, 0.0 }
 0x507   : > { %1075 = vadd.xlane.f32.xlu1 %v1074_v48 }
 0x509   : > { %v2103_v49 = vpop.eup %2102 }
 0x50a   : > { %v1077_v50 = vsel %vm833_vm4, %v2103_v49, 0.0 }
 0x50b   : > { %1078 = vadd.xlane.f32.xlu1 %v1077_v50 }
 0x51c   : > { %1090 = vrot.lane.b32.xlu1 %v2700_v57, %s2341_s14 }
 0x594   : > { %v1076_v51 = vpop.xlane.xlu1 %1075 }
 0x595   : > { %2104 = vrcp.f32 %v1076_v51 }
 0x598   : > { %v1079_v52 = vpop.xlane.xlu1 %1078 }
 0x599   : > { %2106 = vrcp.f32 %v1079_v52 }
 0x59c   : > { %v1091_v53 = vpop.permute.xlu1 %1090 }
 0x59d   : > { %v1096_v54 = vsel %vm864_vm5, %v1091_v53, 0 }
 0x59e   : > { %1939 = vmatpush3.bf16.msra.mxu1 %v1096_v54 }
 0x59f   : > { %v2105_v55 = vpop.eup %2104  ;;  %1950 = vmatprep.subr.bf16.mxu1 %v2337_v3 }
 0x5a0   : > { %v1081_v56 = vmul.f32 %v2105_v55, %v2101_v47 }
 0x5a2   : > { %v1084_v58 = vpack.c.bf16 %v1081_v56, %v1081_v56 }
 0x5a3   : > { %v2107_v59 = vpop.eup %2106 }
 0x5a4   : > { %v1083_v60 = vmul.f32 %v2107_v59, %v2103_v49  ;;  %1810 = vst.msk [vmem:[%s2642_s1 + $0x4] sm:$0xf] %vm858_vm6, %v1084_v58  ;;  %1941 = vmatmul.mubr.msk.bf16.vlgmr.msra.gmra.mrb[16].mxu1 %vm833_vm4, %v1084_v58 }
 0x5a5   : > { %1954 = vmatprep.mubr.msk.bf16.mxu1 %vm2338_vm1, %v2337_v3  ;;  %1951 = vmatpush3.bf16.msra.mxu1 %v2084_v61 }
 0x5a6   : > { %v1085_v57 = vpack.c.bf16 %v1083_v60, %v1083_v60  ;;  %1952 = vmatprep.subr.bf16.mxu1 %v2337_v3 }
 0x5a8   : > { %1811 = vst.msk [vmem:[%s2642_s1 + $0xc] sm:$0xf] %vm858_vm6, %v1085_v57  ;;  %1947 = vmatmul.mubr.msk.bf16.vlgmr.msra.gmra.mrb[20].mxu0 %vm833_vm4, %v1085_v57 }
 0x5a9   : > { %1962 = vmatprep.mubr.msk.bf16.mxu0 %vm2338_vm1, %v2337_v3  ;;  %1953 = vmatpush3.bf16.msra.mxu1 %v2085_v62 }
 0x5aa   : > { %1966 = vmatprep.subr.bf16.mxu1 %v2337_v3  ;;  %1959 = vmatpush3.bf16.msra.mxu0 %v2086_v35 }
 0x5ab   : > { %1960 = vmatprep.subr.bf16.mxu0 %v2337_v3 }
 0x5ae   : > { %1961 = vmatpush3.bf16.msra.mxu0 %v2087_v36 }
 0x677   : > { %v1132_v63 = vpop.f32.mrb[16].mxu1 }
 0x678   : > { %1189 = vrot.lane.b32.xlu1 %v1132_v63, %s2342_s13  ;;  %v1942_v0 = vpop.f32.mrb[17].mxu1 }
 0x679   : > { %v1135_v1 = vpop.f32.mrb[18].mxu1 }
 0x67a   : > { %v1943_v2 = vpop.f32.mrb[19].mxu1  ;;  %v2090_v1 = vld [vmem:[%s2633_s5 + $0x10] sm:$0xff]  }
 0x67b   : > { %v1181_v4 = vpop.f32.mrb[20].mxu0  ;;  %v2091_v2 = vld [vmem:[%s2633_s5 + $0x18] sm:$0xff]  }
 0x67c   : > { %v1948_v5 = vpop.f32.mrb[21].mxu0  ;;  %1191 = vrot.lane.b32.xlu1 %v1181_v4, %s2342_s13 }
 0x67d   : > { %v1184_v8 = vpop.f32.mrb[22].mxu0 }
 0x67e   : > { %v1949_v10 = vpop.f32.mrb[23].mxu0 }
 0x6ea   : > { %v1190_v11 = vpop.permute.xlu1 %1189 }
 0x6eb   : > { %1196 = vst.msk [vmem:[#allocation3] sm:$0xff] %vm1195_vm7, %v1190_v11 }
 0x6ee   : > { %v1192_v12 = vpop.permute.xlu1 %1191 }
 0x6ef   : > { %1197 = vst.msk [vmem:[#allocation3 + $0x8] sm:$0xff] %vm1195_vm7, %v1192_v12 }
 0x6f2   : > { %v1198_v13 = vld [vmem:[#allocation3] sm:$0xff] }
 0x6f6   : > { %v1199_v14 = vld [vmem:[#allocation3 + $0x8] sm:$0xff] }
 0x6f7   : > { %v1200_v15 = vpack.c.bf16 %v1199_v14, %v1198_v13 }
 0x6f9   : > { %1955 = vmatmul.mubr.msk.bf16.vlgmr.msra.gmra.mrb[20].mxu1 %vm567_vm2, %v1200_v15 }
 0x6fa   : > { %1974 = vmatprep.mubr.msk.bf16.mxu1 %vm2338_vm1, %v2337_v3  ;;  %1967 = vmatpush3.bf16.msra.mxu1 %v2088_v37 }
 0x6fb   : > { %1968 = vmatprep.subr.bf16.mxu1 %v2337_v3 }
 0x6fe   : > { %1969 = vmatpush3.bf16.msra.mxu1 %v2089_v38 }
 0x6ff   : > { %1970 = vmatprep.subr.bf16.mxu1 %v2337_v3 }
 0x702   : > { %1971 = vmatpush3.bf16.msra.mxu1 %v2090_v1 }
 0x703   : > { %1972 = vmatprep.subr.bf16.mxu1 %v2337_v3 }
 0x706   : > { %1973 = vmatpush3.bf16.msra.mxu1 %v2091_v2 }
 0x7cc   : > { %v1257_v9 = vpop.f32.mrb[20].mxu1 }
 0x7cd   : > { %v1258_v17 = vadd.f32 %v1257_v9, %v1218_v16  ;;  %v1956_v18 = vpop.f32.mrb[21].mxu1  ;;  %v1821_v9 = vld [vmem:[%s2638_s20 + $0x2] ss:$0 sm:$0xff] }
 0x7ce   : > { %v1260_v19 = vpop.f32.mrb[22].mxu1 }
 0x7cf   : > { %v1261_v20 = vadd.f32 %v1260_v19, %v1218_v16  ;;  %v1957_v21 = vpop.f32.mrb[23].mxu1  ;;  %v1264_v22 = vadd.f32 %v1258_v17, %v2650_v6 }
 0x7d1   : > { %v1266_v23 = vsel %vm567_vm2, %v1264_v22, 0.0  ;;  %v1265_v24 = vadd.f32 %v1261_v20, %v2652_v7 }
 0x7d2   : > { %1267 = vadd.xlane.f32.xlu1 %v1266_v23 }
 0x7d3   : > { %v1269_v25 = vsel %vm567_vm2, %v1265_v24, 0.0 }
 0x7d4   : > { %1270 = vadd.xlane.f32.xlu0 %v1269_v25 }
 0x85f   : > { %v1268_v26 = vpop.xlane.xlu1 %1267 }
 0x860   : > { %v1273_v27 = vmul.f32 0.03125, %v1268_v26 }
 0x861   : > { %v1271_v28 = vpop.xlane.xlu0 %1270 }
 0x862   : > { %v1275_v29 = vsub.f32 %v1264_v22, %v1273_v27  ;;  %v1274_v30 = vmul.f32 0.03125, %v1271_v28 }
 0x864   : > { %v1276_v31 = vsub.f32 %v1265_v24, %v1274_v30  ;;  %v1277_v32 = vmul.f32 %v1275_v29, %v1275_v29 }
 0x866   : > { %v1279_v6 = vsel %vm567_vm2, %v1277_v32, 0.0  ;;  %v1278_v33 = vmul.f32 %v1276_v31, %v1276_v31 }
 0x867   : > { %1280 = vadd.xlane.f32.xlu0 %v1279_v6 }
 0x868   : > { %v1282_v7 = vsel %vm567_vm2, %v1278_v33, 0.0 }
 0x869   : > { %1283 = vadd.xlane.f32.xlu1 %v1282_v7 }
 0x87a   : > { %1337 = vrot.lane.b32.xlu1 %v1817_v34, %s2340_s11 }
 0x87d   : > { %1315 = vrot.lane.b32.xlu0 %v1817_v34, %s2339_s0 }
 0x8f4   : > { %v1281_v39 = vpop.xlane.xlu0 %1280 }
 0x8f5   : > { %v1285_v40 = vmul.f32 0.032258064, %v1281_v39 }
 0x8f6   : > { %v1284_v41 = vpop.xlane.xlu1 %1283 }
 0x8f7   : > { %2108 = vrsqrt.f32 %v1285_v40  ;;  %v1286_v42 = vmul.f32 0.032258064, %v1284_v41  ;;  %vm1289_vm8 = vcmp.eq.f32.partialorder %v1285_v40, inf  ;;  %v1292_v45 = vand.u32 2147483648, %v1285_v40 }
 0x8f8   : > { %vm1291_vm9 = vcmp.eq.f32.partialorder %v1285_v40, 0.0  ;;  %v1316_v57 = vpop.permute.xlu0 %1315 }
 0x8f9   : > { %2110 = vrsqrt.f32 %v1286_v42  ;;  %vm1296_vm10 = vcmp.eq.f32.partialorder %v1286_v42, inf  ;;  %v1299_v50 = vand.u32 2147483648, %v1286_v42  ;;  %vm1298_vm11 = vcmp.eq.f32.partialorder %v1286_v42, 0.0 }
 0x8fa   : > { %v1338_v4 = vpop.permute.xlu1 %1337 }
 0x901   : > { %v2109_v43 = vpop.eup %2108 }
 0x902   : > { %v1288_v44 = vmul.f32 %v2109_v43, %v1285_v40 }
 0x903   : > { %v2111_v46 = vpop.eup %2110 }
 0x904   : > { %v1290_v47 = vsel %vm1289_vm8, %v1285_v40, %v1288_v44  ;;  %v1295_v48 = vmul.f32 %v2111_v46, %v1286_v42 }
 0x905   : > { %v1293_v49 = vsel %vm1291_vm9, %v1292_v45, %v1290_v47 }
 0x906   : > { %v1301_v51 = vadd.f32 1e-06, %v1293_v49  ;;  %v1297_v52 = vsel %vm1296_vm10, %v1286_v42, %v1295_v48 }
 0x907   : > { %v1300_v53 = vsel %vm1298_vm11, %v1299_v50, %v1297_v52 }
 0x908   : > { %2112 = vrcp.f32 %v1301_v51  ;;  %v1302_v54 = vadd.f32 1e-06, %v1300_v53 }
 0x90a   : > { %2114 = vrcp.f32 %v1302_v54 }
 0x912   : > { %v2113_v55 = vpop.eup %2112 }
 0x913   : > { %v1304_v56 = vmul.f32 %v2113_v55, %v1275_v29 }
 0x914   : > { %v2115_v58 = vpop.eup %2114 }
 0x915   : > { %v1306_v59 = vmul.f32 %v2115_v58, %v1276_v31  ;;  %v1313_v60 = vmul.f32 %v1817_v34, %v1304_v56 }
 0x917   : > { %v1314_v61 = vmul.f32 %v1817_v34, %v1306_v59  ;;  %v1318_v62 = vadd.f32 %v1316_v57, %v1313_v60 }
 0x919   : > { %v1319_v63 = vadd.f32 %v1316_v57, %v1314_v61 }
 0x91b   : > { %v1320_v0 = vpack.c.bf16 %v1319_v63, %v1318_v62 }
 0x91d   : > { %1963 = vmatmul.mubr.msk.bf16.vlgmr.msra.gmra.mrb[24].mxu0 %vm567_vm2, %v1320_v0 }
 0x9f0   : > { %v1377_v5 = vpop.f32.mrb[24].mxu0 }
 0x9f1   : > { %v1378_v8 = vadd.f32 %v1377_v5, %v1338_v4  ;;  %v1964_v10 = vpop.f32.mrb[25].mxu0 }
 0x9f2   : > { %v1380_v11 = vpop.f32.mrb[26].mxu0 }
 0x9f3   : > { %v1381_v12 = vadd.f32 %v1380_v11, %v1338_v4  ;;  %v1965_v13 = vpop.f32.mrb[27].mxu0  ;;  %v1384_v14 = vmax.f32 %v1378_v8, 0.0 }
 0x9f5   : > { %v1385_v15 = vmax.f32 %v1381_v12, 0.0 }
 0x9f7   : > { %v1386_v16 = vpack.c.bf16 %v1385_v15, %v1384_v14 }
 0x9f9   : > { %1975 = vmatmul.mubr.msk.bf16.vlgmr.msra.gmra.mrb[24].mxu1 %vm1425_vm12, %v1386_v16 }
 0xacc   : > { %v1463_v17 = vpop.f32.mrb[24].mxu1 }
 0xacd   : > { %v1464_v18 = vadd.f32 %v1821_v9, %v1463_v17  ;;  %v1976_v19 = vpop.f32.mrb[25].mxu1 }
 0xace   : > { %v1466_v20 = vpop.f32.mrb[26].mxu1 }
 0xacf   : > { %v1467_v3 = vadd.f32 %v1821_v9, %v1466_v20  ;;  %v1977_v21 = vpop.f32.mrb[27].mxu1  ;;  %v1470_v22 = vadd.f32 %v1464_v18, %v1318_v62 }
 0xad1   : > { %v1472_v23 = vsel %vm567_vm2, %v1470_v22, 0.0  ;;  %v1471_v24 = vadd.f32 %v1467_v3, %v1319_v63 }
 0xad2   : > { %1473 = vadd.xlane.f32.xlu1 %v1472_v23 }
 0xad3   : > { %v1475_v25 = vsel %vm567_vm2, %v1471_v24, 0.0 }
 0xad4   : > { %1476 = vadd.xlane.f32.xlu0 %v1475_v25 }
 0xb5f   : > { %v1474_v26 = vpop.xlane.xlu1 %1473 }
 0xb60   : > { %v1478_v27 = vmul.f32 0.03125, %v1474_v26 }
 0xb61   : > { %v1477_v28 = vpop.xlane.xlu0 %1476 }
 0xb62   : > { %v1480_v29 = vsub.f32 %v1470_v22, %v1478_v27  ;;  %v1479_v30 = vmul.f32 0.03125, %v1477_v28 }
 0xb64   : > { %v1481_v31 = vsub.f32 %v1471_v24, %v1479_v30  ;;  %v1482_v32 = vmul.f32 %v1480_v29, %v1480_v29 }
 0xb66   : > { %v1484_v6 = vsel %vm567_vm2, %v1482_v32, 0.0  ;;  %v1483_v33 = vmul.f32 %v1481_v31, %v1481_v31 }
 0xb67   : > { %1485 = vadd.xlane.f32.xlu0 %v1484_v6 }
 0xb68   : > { %v1487_v7 = vsel %vm567_vm2, %v1483_v33, 0.0 }
 0xb69   : > { %1488 = vadd.xlane.f32.xlu1 %v1487_v7 }
 0xbf4   : > { %v1486_v34 = vpop.xlane.xlu0 %1485 }
 0xbf5   : > { %v1490_v35 = vmul.f32 0.032258064, %v1486_v34 }
 0xbf6   : > { %v1489_v36 = vpop.xlane.xlu1 %1488 }
 0xbf7   : > { %2116 = vrsqrt.f32 %v1490_v35  ;;  %v1491_v37 = vmul.f32 0.032258064, %v1489_v36  ;;  %vm1494_vm13 = vcmp.eq.f32.partialorder %v1490_v35, inf  ;;  %v1497_v41 = vand.u32 2147483648, %v1490_v35 }
 0xbf8   : > { %vm1496_vm14 = vcmp.eq.f32.partialorder %v1490_v35, 0.0 }
 0xbf9   : > { %2118 = vrsqrt.f32 %v1491_v37  ;;  %vm1501_vm15 = vcmp.eq.f32.partialorder %v1491_v37, inf  ;;  %v1504_v44 = vand.u32 2147483648, %v1491_v37  ;;  %vm1503_vm0 = vcmp.eq.f32.partialorder %v1491_v37, 0.0 }
 0xc01   : > { %v2117_v38 = vpop.eup %2116 }
 0xc02   : > { %v1493_v39 = vmul.f32 %v2117_v38, %v1490_v35 }
 0xc03   : > { %v2119_v40 = vpop.eup %2118 }
 0xc04   : > { %v1500_v42 = vmul.f32 %v2119_v40, %v1491_v37  ;;  %v1495_v43 = vsel %vm1494_vm13, %v1490_v35, %v1493_v39 }
 0xc05   : > { %v1498_v45 = vsel %vm1496_vm14, %v1497_v41, %v1495_v43 }
 0xc06   : > { %v1506_v46 = vadd.f32 1e-06, %v1498_v45  ;;  %v1502_v47 = vsel %vm1501_vm15, %v1491_v37, %v1500_v42 }
 0xc07   : > { %v1505_v48 = vsel %vm1503_vm0, %v1504_v44, %v1502_v47 }
 0xc08   : > { %2120 = vrcp.f32 %v1506_v46  ;;  %v1507_v49 = vadd.f32 1e-06, %v1505_v48 }
 0xc0a   : > { %2122 = vrcp.f32 %v1507_v49 }
 0xc12   : > { %v2121_v50 = vpop.eup %2120 }
 0xc13   : > { %v1509_v51 = vmul.f32 %v2121_v50, %v1480_v29 }
 0xc14   : > { %v2123_v52 = vpop.eup %2122 }
 0xc15   : > { %1514 = vrot.lane.b32.xlu0 %v1509_v51, %s2343_s15  ;;  %v1511_v53 = vmul.f32 %v2123_v52, %v1481_v31 }
 0xc17   : > { %1516 = vrot.lane.b32.xlu1 %v1511_v53, %s2343_s15 }
 0xc1b   : > { %1522 = vrot.lane.b32.xlu1 %v1821_v9, %s2339_s0 }
 0xc87   : > { %v1515_v54 = vpop.permute.xlu0 %1514 }
 0xc88   : > { %v1520_v56 = vmul.f32 %v1821_v9, %v1515_v54 }
 0xc89   : > { %v1517_v55 = vpop.permute.xlu1 %1516 }
 0xc8a   : > { %v1521_v58 = vmul.f32 %v1821_v9, %v1517_v55 }
 0xc8d   : > { %v1523_v59 = vpop.permute.xlu1 %1522 }
 0xc8e   : > { %v1525_v60 = vadd.f32 %v1523_v59, %v1520_v56  ;;  %v1526_v57 = vadd.f32 %v1523_v59, %v1521_v58 }
 0xc90   : > { %1531 = vrot.lane.b32.xlu1 %v1526_v57, %s2339_s0  ;;  %1529 = vrot.lane.b32.xlu0 %v1525_v60, %s2339_s0 }
 0xcfd   : > { %1540 = sbr.rel (%p1827_p4) target bundleno = 3333 (0xd05), region = 72 }
 0xd02   : > { %v1532_v61 = vpop.permute.xlu1 %1531  ;;  %v1530_v62 = vpop.permute.xlu0 %1529 }
 0xd03   : > { %1536 = vst.msk [vmem:[#allocation2 + $0x8] sm:$0xff] %vm567_vm2, %v1532_v61  ;;  %1535 = vst.msk [vmem:[#allocation2] sm:$0xff] %vm567_vm2, %v1530_v62 }
 0xd04   : > { %1541 = vst.msk [vmem:[#allocation10] sm:$0xff] %vm567_vm2, %v1530_v62  ;;  %1542 = vst.msk [vmem:[#allocation10 + $0x8] sm:$0xff] %vm567_vm2, %v1532_v61 }
 0xd05 PF: > { %s2344_s5 = smov [#allocation10]   ;;  %p2945_p3 = scmp.eq.s32.totalorder %s2507_s4, 1 }
 0xd06   : > { %s1557_s18 = sshll.u32 %s2344_s5, 4  ;;  %s1558_s18 = int_to_ptr.vmem [resolvable:$true] %s1557_s18 }
 0xd07   : > { %s2212_s29 = scalar_lea.vmem %s1558_s18, 256  ;;  %p2219_p11 = scmp.lt.s32.totalorder %s1558_s18, %s1558_s18 }
 0xd08   : > { %p2213_p0 = scmp.ne.s32.totalorder %s1558_s18, %s2212_s29  ;;  %p2220_p9 = scmp.lt.s32.totalorder %s2212_s29, %s2212_s29 }
 0xd0a   : > { %p2214_p5 = pnand %p2213_p0, %p2945_p3  ;;  %p2221_p2 = por %p2220_p9, %p2219_p11 }
 0xd0c   : > { %p2215_p12 = pneg %p2214_p5 }
 0xd0e   : > { %p2222_p6 = pnand %p2221_p2, %p2215_p12 }
 0xd10   : > { %2225 = shalt.err (!%p2222_p6)
}
 0xd11   : > { %s2226_s23 = scalar_lea.hbm %s2897_s8, 256  ;;  %p2946_p1 = pmov %p2945_p3 }
 0xd12   : > { %p2227_p10 = scmp.ne.s32.totalorder %s2897_s8, %s2226_s23  ;;  %p2232_p7 = scmp.lt.u32.totalorder %s2226_s23, %s2897_s8 }
 0xd14   : > { %p2228_p13 = pnand %p2227_p10, %p2946_p1 }
 0xd16   : > { %p2229_p8 = pneg %p2228_p13 }
 0xd18   : > { %p2234_p4 = pnand %p2232_p7, %p2229_p8 }
 0xd1a   : > { %2237 = shalt.err (!%p2234_p4)
}
 0xd1b   : > { %s2345_s20 = smov 128   ;;  %s2346_s21 = smov 8  }
 0xd1c   : > { %p2947_p0 = pmov %p2946_p1  ;;  %s1841_s28 = sshll.u32 %s2320_s12, 8 }
 0xd1d   : > { %s2829_s15 = scalar_lea.hbm %s2898_s9, %s1841_s28  ;;  %s1576_s5 = sshll.u32 %s2642_s1, 4  ;;  %s2832_s5 = int_to_ptr.vmem [resolvable:$true] %s1576_s5 }
 0xd1e   : > { %1988 = dma.vmem_to_hbm [thread:$0]  (%p2947_p0), %s1558_s18, 256, %s2897_s8, [#allocation6], %s2345_s20, %s2345_s20, %s2346_s21  }
 0xd1f   : > { %s2948_s29 = sand.u32 1, %s2312_s10   ;;  %s2238_s19 = scalar_lea.vmem %s2832_s5, 256 }
 0xd20   : > { %s2836_s27 = scalar_lea.sflag [#allocation12], %s2948_s29  ;;  %p2239_p3 = scmp.ne.s32.totalorder %s2832_s5, %s2238_s19 }
 0xd21   : > { %p2949_p5 = scmp.ne.s32.totalorder %s2928_s25, 0  ;;  %s2347_s12 = smov [#allocation11]  }
 0xd22   : > { %s2242_s18 = sshll.u32 %s2347_s12, 4  ;;  %s2243_s18 = int_to_ptr.vmem [resolvable:$false] %s2242_s18 }
 0xd23   : > { %p2240_p12 = pnand %p2239_p3, %p2949_p5  ;;  %s2244_s23 = scalar_lea.vmem %s2243_s18, 512 }
 0xd24   : > { %p2245_p9 = scmp.lt.s32.totalorder %s2832_s5, %s2243_s18  ;;  %p2246_p2 = scmp.lt.s32.totalorder %s2244_s23, %s2238_s19 }
 0xd25   : > { %p2241_p11 = pneg %p2240_p12 }
 0xd26   : > { %p2247_p6 = por %p2246_p2, %p2245_p9 }
 0xd28   : > { %p2248_p10 = pnand %p2247_p6, %p2241_p11 }
 0xd2a   : > { %2251 = shalt.err (!%p2248_p10)
}
 0xd2b   : > { %s2252_s1 = scalar_lea.hbm %s2829_s15, 256  ;;  %s2256_s22 = scalar_lea.hbm %s2898_s9, 512 }
 0xd2c   : > { %p2253_p1 = scmp.ne.s32.totalorder %s2829_s15, %s2252_s1  ;;  %p2257_p7 = scmp.lt.u32.totalorder %s2829_s15, %s2898_s9 }
 0xd2d   : > { %p2258_p4 = scmp.lt.u32.totalorder %s2256_s22, %s2252_s1  ;;  %p2260_p3 = scmp.lt.u32.totalorder %s2252_s1, %s2829_s15 }
 0xd2e   : > { %p2254_p13 = pnand %p2253_p1, %p2949_p5 }
 0xd2f   : > { %p2259_p0 = por %p2258_p4, %p2257_p7 }
 0xd30   : > { %p2255_p8 = pneg %p2254_p13 }
 0xd31   : > { %p2261_p12 = por %p2260_p3, %p2259_p0 }
 0xd33   : > { %p2262_p11 = pnand %p2261_p12, %p2255_p8 }
 0xd35   : > { %2265 = shalt.err (!%p2262_p11)
}
 0xd36   : > { %s2348_s21 = smov 4   ;;  %p2950_p9 = scmp.eq.s32.totalorder %s2507_s4, 1 }
 0xd37   : > { %1989 = dma.vmem_to_hbm [thread:$0]  (%p2949_p5), %s2832_s5, 256, %s2829_s15, %s2836_s27, %s2340_s11, %s2340_s11, %s2348_s21  }
 0xd38   : > { %2299 = dma.done.wait (%p2950_p9), [#allocation6], 256   ;;  %p2951_p2 = pmov %p2950_p9 }
 0xd3a   : > { %2301 = vsyncadd (%p2951_p2), [#allocation6], 4294967040 }
 0xd3b PF: > { %s2952_s0 = sld [smem:[#allocation22_spill]]  ;;  %s2953_s14 = sld [smem:[#allocation19_spill]] }
 0xd3c   : > { %s1595_s28 = sand.u32 1, %s2308_s30  }
 0xd3d   : > { %s1596_s25 = scalar_lea.sflag [#allocation12], %s1595_s28 }
 0xd41   : > { %p2954_p6 = scmp.ne.s32.totalorder %s2952_s0, 0  ;;  %p2955_p10 = scmp.ge.s32.totalorder %s2953_s14, 2 }
 0xd43   : > { %p2005_p1 = pnand %p2955_p10, %p2954_p6 }
 0xd45   : > { %2303 = dma.done.wait (!%p2005_p1), %s1596_s25, 256  }
 0xd46   : > { %2305 = vsyncadd (!%p2005_p1), %s1596_s25, 4294967040  ;;  %s28_s14 = sadd.s32 1, %s2953_s14   ;;  %s2956_s11 = sld [smem:[#allocation17_spill]] }
 0xd47   : > { %p25_p13 = scmp.ge.s32.totalorder %s28_s14, 4   ;;  %s2957_s17 = sld [smem:[#allocation21_spill]] }
 0xd48   : > { %s2958_s12 = sld [smem:[#allocation18_spill]]  ;;  %s2959_s13 = sld [smem:[#allocation20_spill]] }
 0xd49   : > { %s2960_s30 = smov %s2312_s10  ;;  %27 = sbr.rel (!%p25_p13) target bundleno = 13 (0xd), region = 148 }
 0xd4c   : > { %s2961_s10 = smov %s2956_s11 }
 0xd4d   : > { %s2962_s11 = smov %s2957_s17 }
 0xd50   :  { %1601 = vsyncpa [#allocation5], 1 }
 0xd51   :  { %1603 = vsyncpa [#allocation5 + $0x1], 1 }
 0xd52   :  { %1604 = vsyncpa [#allocation8], 1 }
 0xd53   :  { %1606 = vsyncpa [#allocation8 + $0x1], 1 }
 0xd54   :  { %1607 = vsyncpa [#allocation6], 1 }
 0xd55   :  { %1609 = vsyncpa [#allocation6 + $0x1], 1 }
 0xd56   :  { %1610 = vsyncpa [#allocation12], 1 }
 0xd57   :  { %1612 = vsyncpa [#allocation12 + $0x1], 1 }

</bundles_post_ra>
